<compile_context>
chip_gen: v7x
topology: tpu7x:2x2x1
jax: 0.10.0
libtpu: 0.0.40
codegen_flags: <defaults>
</compile_context>

<pallas_src>
import functools

import jax
import jax.numpy as jnp
from jax.experimental import pallas as pl
from jax.experimental.pallas import tpu as pltpu


_TILE_M = 2048  # lane-axis tile for all GEMMs (multiple of 128)

# MXU-native bf16 operands on TPU; f32 elsewhere (the CPU DotThunk used by the
# interpret path does not implement BF16 x BF16 = F32).  This workload is
# HBM/glue bound (Cout <= 18), so the MXU pass count is irrelevant either way.
_DOT_DTYPE = jnp.bfloat16 if jax.default_backend() == "tpu" else jnp.float32


def _nbytes(x):
    return int(x.size) * x.dtype.itemsize


def _round_up(x, m):
    return ((x + m - 1) // m) * m


def _choose_mp_tm(m):
    """Padded M and lane-tile so that tm | mp, 128 | tm."""
    mp = _round_up(m, 128)
    if mp <= _TILE_M:
        return mp, mp
    return _round_up(m, _TILE_M), _TILE_M


def _pad_cols(cols, mp):
    m = cols.shape[-1]
    if mp == m:
        return cols
    pad = [(0, 0)] * (cols.ndim - 1) + [(0, mp - m)]
    return jnp.pad(cols, pad)


# ----------------------------- Pallas kernels ----------------------------- #
# All GEMMs are "transposed": they produce (Cout, M) blocks so the large
# M = N*Ho*Wo dimension sits on the 128-lane axis (dense, unmasked stores).
# Matmul operands are _DOT_DTYPE (bf16 on TPU); accumulation + epilogue are f32.

def _gemm_t_bias_relu_kernel(w_ref, x_ref, b_ref, o_ref):
    # w_ref: (Cout, K); x_ref: (K, TM) bf16; b_ref: (Cout, 1) f32
    acc = jnp.dot(w_ref[...], x_ref[...].astype(w_ref.dtype),
                  preferred_element_type=jnp.float32)
    o_ref[...] = jnp.maximum(acc + b_ref[...], 0.0).astype(o_ref.dtype)


def _gemm_t_bias_scale_kernel(w_ref, x_ref, b_ref, o_ref):
    # lastConv followed by the final "/ 10".
    acc = jnp.dot(w_ref[...], x_ref[...].astype(w_ref.dtype),
                  preferred_element_type=jnp.float32)
    o_ref[...] = ((acc + b_ref[...]) * 0.1).astype(o_ref.dtype)


def _convt4_phase_kernel(w_ref, x_ref, b_ref, y_ref, st_ref, *, m_real, tm):
    # 4-phase ConvTranspose2d(4, s=2, p=1) + bias + ReLU, plus streaming BN stats.
    # w_ref: (4, Cout, K2); x_ref: (4, K2, TM) bf16; b_ref: (Cout, 1) f32
    # y_ref: (4, Cout, TM) bf16; st_ref: (1, Cout, 2) f32 -> per-tile (sum, sumsq)
    cout = w_ref.shape[1]
    col0 = pl.program_id(0) * tm
    lane = jax.lax.broadcasted_iota(jnp.int32, (1, tm), 1)
    valid = (col0 + lane) < m_real            # mask M-padding out of the stats
    bias = b_ref[...]
    s_sum = jnp.zeros((cout, 1), jnp.float32)
    s_sq = jnp.zeros((cout, 1), jnp.float32)
    for p in range(4):                        # unrolled: 4 dense GEMMs
        acc = jnp.dot(w_ref[p], x_ref[p].astype(w_ref.dtype),
                      preferred_element_type=jnp.float32)
        y = jnp.maximum(acc + bias, 0.0)
        y_ref[p] = y.astype(y_ref.dtype)
        ym = jnp.where(valid, y, 0.0)
        s_sum = s_sum + jnp.sum(ym, axis=1, keepdims=True)
        s_sq = s_sq + jnp.sum(ym * ym, axis=1, keepdims=True)
    st_ref[...] = jnp.concatenate([s_sum, s_sq], axis=1)[None]


# --------------------------- GEMM runner (Pallas) -------------------------- #

def _run_gemm_t(kernel, w_t, cols, b_col, out_dtype, tm):
    """out (Cout, Mp) = w_t (Cout, K) @ cols (K, Mp) with a fused f32 epilogue."""
    cout, k = w_t.shape
    mp = cols.shape[1]
    grid_m = mp // tm
    cost = pl.CostEstimate(
        flops=2 * cout * k * mp, transcendentals=0,
        bytes_accessed=_nbytes(cols) + _nbytes(w_t) + _nbytes(b_col)
        + cout * mp * jnp.dtype(out_dtype).itemsize)
    return pl.pallas_call(
        kernel,
        grid=(grid_m,),
        in_specs=[pl.BlockSpec((cout, k), lambda i: (0, 0)),   # weights: resident
                  pl.BlockSpec((k, tm), lambda i: (0, i)),     # cols: M-tiled
                  pl.BlockSpec((cout, 1), lambda i: (0, 0))],  # bias: resident
        out_specs=pl.BlockSpec((cout, tm), lambda i: (0, i)),
        out_shape=jax.ShapeDtypeStruct((cout, mp), out_dtype),
        compiler_params=pltpu.CompilerParams(dimension_semantics=("parallel",)),
        cost_estimate=cost,
    )(w_t, cols, b_col)


# ------------------------------ conv wrappers ------------------------------ #
# Activations are (C, N, H, W) bf16; im2col builds the (K, M) bf16 patch matrix
# directly (pad + strided slices + one concat, no transposes).

def conv2d_gemm(x, w, b, stride, pad, kernel, out_dtype):
    # x: (Cin, N, H, W) bf16; w: (k, k, Cin, Cout) f32; b: (Cout,) f32
    k, _, cin, cout = w.shape
    _, n, h, wd = x.shape
    ho = (h + 2 * pad - k) // stride + 1
    wo = (wd + 2 * pad - k) // stride + 1
    m = n * ho * wo
    mp, tm = _choose_mp_tm(m)
    xp = jnp.pad(x, ((0, 0), (0, 0), (pad, pad), (pad, pad)))
    taps = [xp[:, :, i:i + stride * (ho - 1) + 1:stride,
                  j:j + stride * (wo - 1) + 1:stride]
            for i in range(k) for j in range(k)]
    cols = jnp.concatenate(taps, axis=0).reshape(k * k * cin, m)    # (K, M) bf16
    cols = _pad_cols(cols, mp)
    w_t = jnp.transpose(w.reshape(k * k * cin, cout)).astype(_DOT_DTYPE)
    b_col = b.reshape(cout, 1).astype(jnp.float32)
    out = _run_gemm_t(kernel, w_t, cols, b_col, out_dtype, tm)
    return out[:, :m].reshape(cout, n, ho, wo)


def convT2d_relu_bn(x, w, b, gamma, beta):
    """ConvTranspose2d(k=4, s=2, p=1) -> ReLU -> BatchNorm (training statistics).

    Exact 4-phase decomposition: y[:, :, 2i+pa, 2j+pb] is a stride-1 conv of the
    *undilated* input with the 2x2 sub-kernel w[pa::2, pb::2].  The weight `w`
    is stored in the conv-equivalent (flipped) layout:
        w[a, b, cin, cout] == torch_convT_weight[cin, cout, 3-a, 3-b].
    BatchNorm is two-pass: the kernel streams per-tile (sum, sumsq); the tiny
    finalize + per-channel affine run in XLA, fused with the phase interleave.
    """
    cin, n, h, wd = x.shape
    cout = w.shape[3]
    k2 = 4 * cin
    m = n * h * wd
    mp, tm = _choose_mp_tm(m)
    grid_m = mp // tm

    cols_list, w_list = [], []
    for pa in range(2):
        for pb in range(2):
            xp = jnp.pad(x, ((0, 0), (0, 0), (1 - pa, pa), (1 - pb, pb)))
            taps = [xp[:, :, di:di + h, dj:dj + wd]
                    for di in range(2) for dj in range(2)]
            cols = jnp.concatenate(taps, axis=0).reshape(k2, m)     # (K2, M) bf16
            cols_list.append(_pad_cols(cols, mp))
            w_list.append(jnp.transpose(w[pa::2, pb::2, :, :].reshape(k2, cout)))
    cols_all = jnp.stack(cols_list, axis=0)                         # (4, K2, Mp)
    w_all = jnp.stack(w_list, axis=0).astype(_DOT_DTYPE)            # (4, Cout, K2)
    b_col = b.reshape(cout, 1).astype(jnp.float32)

    cost = pl.CostEstimate(
        flops=2 * 4 * cout * k2 * mp, transcendentals=0,
        bytes_accessed=_nbytes(cols_all) + _nbytes(w_all) + _nbytes(b_col)
        + 4 * cout * mp * 2 + grid_m * cout * 2 * 4)

    kernel = functools.partial(_convt4_phase_kernel, m_real=m, tm=tm)
    y, stats = pl.pallas_call(
        kernel,
        grid=(grid_m,),
        in_specs=[pl.BlockSpec((4, cout, k2), lambda i: (0, 0, 0)),  # resident
                  pl.BlockSpec((4, k2, tm), lambda i: (0, 0, i)),    # M-tiled
                  pl.BlockSpec((cout, 1), lambda i: (0, 0))],        # resident
        out_specs=[pl.BlockSpec((4, cout, tm), lambda i: (0, 0, i)),
                   pl.BlockSpec((1, cout, 2), lambda i: (i, 0, 0))],
        out_shape=[jax.ShapeDtypeStruct((4, cout, mp), jnp.bfloat16),
                   jax.ShapeDtypeStruct((grid_m, cout, 2), jnp.float32)],
        compiler_params=pltpu.CompilerParams(dimension_semantics=("parallel",)),
        cost_estimate=cost,
    )(w_all, cols_all, b_col)

    # BatchNorm finalize (tiny, per-channel) - biased batch variance, eps=1e-5.
    tot = jnp.sum(stats, axis=0)                       # (Cout, 2)
    cnt = jnp.float32(4 * m)                           # == N * 2H * 2W
    mean = tot[:, 0] / cnt
    var = tot[:, 1] / cnt - mean * mean
    scale = gamma * jax.lax.rsqrt(var + 1e-5)
    shift = beta - mean * scale

    # Normalize + interleave phases: y[2*pa+pb, c, (n*H+i)*W+j] -> out[c, n, 2i+pa, 2j+pb]
    # TODO(synk): the strided (lane-interleaved) scatter of the 4 phases is not
    # expressible as a dense out_spec tile, so this re-layout (with the BN affine
    # fused into it) is left to XLA.
    yf = y[:, :, :m].astype(jnp.float32) * scale[None, :, None] + shift[None, :, None]
    yf = yf.reshape(2, 2, cout, n, h, wd)
    yf = jnp.transpose(yf, (2, 3, 4, 0, 5, 1)).reshape(cout, n, 2 * h, 2 * wd)
    return yf.astype(jnp.bfloat16)


def _avg_pool2x2_ceil(x):
    """F.avg_pool2d(x, 2, ceil_mode=True) on NCHW input (thin plain-JAX glue).

    ceil_mode windows that run past the edge are divided by the count of valid
    elements (PyTorch behaviour for padding=0)."""
    n, c, h, w = x.shape
    ho, wo = -(-h // 2), -(-w // 2)
    xp = jnp.pad(x, ((0, 0), (0, 0), (0, 2 * ho - h), (0, 2 * wo - w)))
    s = xp.reshape(n, c, ho, 2, wo, 2).sum(axis=(3, 5))
    ones = jnp.pad(jnp.ones((h, w), x.dtype), ((0, 2 * ho - h), (0, 2 * wo - w)))
    cnt = ones.reshape(ho, 2, wo, 2).sum(axis=(1, 3))
    return s / cnt


# ------------------------------- model forward ----------------------------- #

def init_params(key, num_layers, channels, dimension=2):
    down_ch = list(channels[0])
    up_out = list(channels[1])
    up_in = [down_ch[d + 1] + (up_out[d + 1] if d + 1 < num_layers else 0)
             for d in range(num_layers)]
    params = {"down": [], "up": [], "bn": []}
    for d in range(num_layers):
        key, k1, k2 = jax.random.split(key, 3)
        params["down"].append({
            "w": 0.1 * jax.random.normal(k1, (3, 3, down_ch[d], down_ch[d + 1]), jnp.float32),
            "b": 0.1 * jax.random.normal(k2, (down_ch[d + 1],), jnp.float32)})
        key, k1, k2 = jax.random.split(key, 3)
        params["up"].append({
            # stored in the conv-equivalent (flipped) layout: w[a,b,cin,cout]
            # == torch ConvTranspose2d weight[cin, cout, 3-a, 3-b]
            "w": 0.1 * jax.random.normal(k1, (4, 4, up_in[d], up_out[d]), jnp.float32),
            "b": 0.1 * jax.random.normal(k2, (up_out[d],), jnp.float32)})
        params["bn"].append({"gamma": jnp.ones((up_out[d],), jnp.float32),
                             "beta": jnp.zeros((up_out[d],), jnp.float32)})
    key, kb = jax.random.split(key)
    params["last"] = {
        "w": jnp.zeros((3, 3, 18, dimension), jnp.float32),   # torch.nn.init.zeros_
        "b": 0.1 * jax.random.normal(kb, (dimension,), jnp.float32)}
    return params


def unet_forward(params, x, y, num_layers):
    # x, y: NCHW (PyTorch convention); internal layout is channel-major
    # (C, N, H, W) bf16 so GEMM outputs need no re-layout between layers.
    x = jnp.concatenate([x, y], axis=1)
    x = jnp.transpose(x, (1, 0, 2, 3)).astype(jnp.bfloat16)   # (C, N, H, W)
    skips = []
    for d in range(num_layers):
        skips.append(x)
        x = conv2d_gemm(x, params["down"][d]["w"], params["down"][d]["b"],
                        stride=2, pad=1, kernel=_gemm_t_bias_relu_kernel,
                        out_dtype=jnp.bfloat16)
    for d in reversed(range(num_layers)):
        x = convT2d_relu_bn(x, params["up"][d]["w"], params["up"][d]["b"],
                            params["bn"][d]["gamma"], params["bn"][d]["beta"])
        sh, sw = skips[d].shape[2], skips[d].shape[3]
        x = jnp.concatenate([x[:, :, :sh, :sw], skips[d]], axis=0)
    # lastConv (zero-init weight) followed by the final "/10", f32 output.
    x = conv2d_gemm(x, params["last"]["w"], params["last"]["b"],
                    stride=1, pad=1, kernel=_gemm_t_bias_scale_kernel,
                    out_dtype=jnp.float32)
    return jnp.transpose(x, (1, 0, 2, 3))        # back to NCHW


def downsample_registration_forward(params, image_A, image_B, num_layers):
    # DownsampleRegistration.forward: avg_pool(k=2, ceil_mode=True) both images,
    # then run the wrapped registration net at half resolution.
    # TODO(synk): the ICON RegistrationModule contract returns a coordinate-
    # transform closure phi_AB; here (as in the reference net) we return the
    # underlying vector-field tensor produced by the net — the closure itself
    # has no Pallas equivalent.
    image_A = _avg_pool2x2_ceil(image_A)
    image_B = _avg_pool2x2_ceil(image_B)
    return unet_forward(params, image_A, image_B, num_layers)


# ---------------------------------- main ----------------------------------- #

if __name__ == "__main__":
    num_layers = 2
    dimension = 2
    # up_channels_out[0]=16 and down_channels[0]=2 so the final skip-concat has
    # 18 channels, matching the hard-coded lastConv = Conv(18, dimension, ...).
    channels = ([2, 8, 16], [16, 8])

    key = jax.random.PRNGKey(0)
    kx, ky, kp = jax.random.split(key, 3)
    image_A = jax.random.normal(kx, (2, 1, 16, 16), jnp.float32)
    image_B = jax.random.normal(ky, (2, 1, 16, 16), jnp.float32)
    params = init_params(kp, num_layers, channels, dimension)

    fwd = jax.jit(functools.partial(downsample_registration_forward,
                                    num_layers=num_layers))
    out = fwd(params, image_A, image_B)
    jax.block_until_ready(out)
    # DownsampleRegistration halves the resolution before running the net.
    assert out.shape == (2, dimension, 8, 8), out.shape
    assert out.dtype == jnp.float32
    print("KERNEL_OK")
</pallas_src>

<mosaic_0001>
module attributes {stable_mosaic.version = 11 : i64} {
  func.func @_gemm_t_bias_relu_kernel(%arg0: i32, %arg1: memref<8x18xf32, #tpu.memory_space<vmem>>, %arg2: memref<18x128xbf16, #tpu.memory_space<vmem>>, %arg3: memref<8x1xf32, #tpu.memory_space<vmem>>, %arg4: memref<8x128xbf16, #tpu.memory_space<vmem>>) attributes {dimension_semantics = [#tpu.dimension_semantics<parallel>], iteration_bounds = array<i64: 1>, scalar_prefetch = 0 : i64, scratch_operands = 0 : i64, tpu.core_type = #tpu.core_type<tc>, window_params = [{pipeline_mode = #tpu.pipeline_mode<synchronous>, transform_indices = @transform_0, window_bounds = array<i64: 8, 18>}, {transform_indices = @transform_1, window_bounds = array<i64: 18, 128>}, {pipeline_mode = #tpu.pipeline_mode<synchronous>, transform_indices = @transform_2, window_bounds = array<i64: 8, 1>}, {transform_indices = @transform_3, window_bounds = array<i64: 8, 128>}]} {
    %c0 = arith.constant 0 : index
    %c0_0 = arith.constant 0 : index
    %0 = vector.load %arg1[%c0, %c0_0] : memref<8x18xf32, #tpu.memory_space<vmem>>, vector<8x18xf32>
    %c0_1 = arith.constant 0 : index
    %c0_2 = arith.constant 0 : index
    %1 = vector.load %arg2[%c0_1, %c0_2] : memref<18x128xbf16, #tpu.memory_space<vmem>>, vector<18x128xbf16>
    %2 = arith.extf %1 : vector<18x128xbf16> to vector<18x128xf32>
    %cst = arith.constant dense<0.000000e+00> : vector<8x128xf32>
    %3 = tpu.matmul %0, %2, %cst {dimension_numbers = #tpu.dot_dimension_numbers<[1], [0], [0], [1], [0, 0, 1, 1], [], []>} : vector<8x18xf32>, vector<18x128xf32>, vector<8x128xf32> -> vector<8x128xf32>
    %c0_3 = arith.constant 0 : index
    %c0_4 = arith.constant 0 : index
    %4 = vector.load %arg3[%c0_3, %c0_4] : memref<8x1xf32, #tpu.memory_space<vmem>>, vector<8x1xf32>
    %5 = vector.broadcast %4 : vector<8x1xf32> to vector<8x128xf32>
    %6 = arith.addf %3, %5 : vector<8x128xf32>
    %cst_5 = arith.constant 0.000000e+00 : f32
    %7 = vector.broadcast %cst_5 : f32 to vector<8x128xf32>
    %8 = arith.maximumf %6, %7 : vector<8x128xf32>
    %9 = arith.truncf %8 : vector<8x128xf32> to vector<8x128xbf16>
    %c0_6 = arith.constant 0 : index
    %c0_7 = arith.constant 0 : index
    %10 = vector.load %arg4[%c0_6, %c0_7] : memref<8x128xbf16, #tpu.memory_space<vmem>>, vector<8x128xbf16>
    tpu.vector_store %arg4[%c0_6, %c0_7], %9 {strides = array<i32>} : memref<8x128xbf16, #tpu.memory_space<vmem>>, vector<8x128xbf16>,
    return
  }
  func.func @transform_0(%arg0: i32) -> (i32, i32) {
    %c0_i32 = arith.constant 0 : i32
    %c0_i32_0 = arith.constant 0 : i32
    %c0_i32_1 = arith.constant 0 : i32
    return %c0_i32, %c0_i32_0 : i32, i32
  }
  func.func @transform_1(%arg0: i32) -> (i32, i32) {
    %c0_i32 = arith.constant 0 : i32
    %c0_i32_0 = arith.constant 0 : i32
    return %c0_i32, %arg0 : i32, i32
  }
  func.func @transform_2(%arg0: i32) -> (i32, i32) {
    %c0_i32 = arith.constant 0 : i32
    %c0_i32_0 = arith.constant 0 : i32
    %c0_i32_1 = arith.constant 0 : i32
    return %c0_i32, %c0_i32_0 : i32, i32
  }
  func.func @transform_3(%arg0: i32) -> (i32, i32) {
    %c0_i32 = arith.constant 0 : i32
    %c0_i32_0 = arith.constant 0 : i32
    return %c0_i32, %arg0 : i32, i32
  }
}

module attributes {stable_mosaic.version = 11 : i64} {
  func.func @_gemm_t_bias_relu_kernel(%arg0: i32, %arg1: memref<16x72xf32, #tpu.memory_space<vmem>>, %arg2: memref<72x128xbf16, #tpu.memory_space<vmem>>, %arg3: memref<16x1xf32, #tpu.memory_space<vmem>>, %arg4: memref<16x128xbf16, #tpu.memory_space<vmem>>) attributes {dimension_semantics = [#tpu.dimension_semantics<parallel>], iteration_bounds = array<i64: 1>, scalar_prefetch = 0 : i64, scratch_operands = 0 : i64, tpu.core_type = #tpu.core_type<tc>, window_params = [{pipeline_mode = #tpu.pipeline_mode<synchronous>, transform_indices = @transform_0, window_bounds = array<i64: 16, 72>}, {transform_indices = @transform_1, window_bounds = array<i64: 72, 128>}, {pipeline_mode = #tpu.pipeline_mode<synchronous>, transform_indices = @transform_2, window_bounds = array<i64: 16, 1>}, {transform_indices = @transform_3, window_bounds = array<i64: 16, 128>}]} {
    %c0 = arith.constant 0 : index
    %c0_0 = arith.constant 0 : index
    %0 = vector.load %arg1[%c0, %c0_0] : memref<16x72xf32, #tpu.memory_space<vmem>>, vector<16x72xf32>
    %c0_1 = arith.constant 0 : index
    %c0_2 = arith.constant 0 : index
    %1 = vector.load %arg2[%c0_1, %c0_2] : memref<72x128xbf16, #tpu.memory_space<vmem>>, vector<72x128xbf16>
    %2 = arith.extf %1 : vector<72x128xbf16> to vector<72x128xf32>
    %cst = arith.constant dense<0.000000e+00> : vector<16x128xf32>
    %3 = tpu.matmul %0, %2, %cst {dimension_numbers = #tpu.dot_dimension_numbers<[1], [0], [0], [1], [0, 0, 1, 1], [], []>} : vector<16x72xf32>, vector<72x128xf32>, vector<16x128xf32> -> vector<16x128xf32>
    %c0_3 = arith.constant 0 : index
    %c0_4 = arith.constant 0 : index
    %4 = vector.load %arg3[%c0_3, %c0_4] : memref<16x1xf32, #tpu.memory_space<vmem>>, vector<16x1xf32>
    %5 = vector.broadcast %4 : vector<16x1xf32> to vector<16x128xf32>
    %6 = arith.addf %3, %5 : vector<16x128xf32>
    %cst_5 = arith.constant 0.000000e+00 : f32
    %7 = vector.broadcast %cst_5 : f32 to vector<16x128xf32>
    %8 = arith.maximumf %6, %7 : vector<16x128xf32>
    %9 = arith.truncf %8 : vector<16x128xf32> to vector<16x128xbf16>
    %c0_6 = arith.constant 0 : index
    %c0_7 = arith.constant 0 : index
    %10 = vector.load %arg4[%c0_6, %c0_7] : memref<16x128xbf16, #tpu.memory_space<vmem>>, vector<16x128xbf16>
    tpu.vector_store %arg4[%c0_6, %c0_7], %9 {strides = array<i32>} : memref<16x128xbf16, #tpu.memory_space<vmem>>, vector<16x128xbf16>,
    return
  }
  func.func @transform_0(%arg0: i32) -> (i32, i32) {
    %c0_i32 = arith.constant 0 : i32
    %c0_i32_0 = arith.constant 0 : i32
    %c0_i32_1 = arith.constant 0 : i32
    return %c0_i32, %c0_i32_0 : i32, i32
  }
  func.func @transform_1(%arg0: i32) -> (i32, i32) {
    %c0_i32 = arith.constant 0 : i32
    %c0_i32_0 = arith.constant 0 : i32
    return %c0_i32, %arg0 : i32, i32
  }
  func.func @transform_2(%arg0: i32) -> (i32, i32) {
    %c0_i32 = arith.constant 0 : i32
    %c0_i32_0 = arith.constant 0 : i32
    %c0_i32_1 = arith.constant 0 : i32
    return %c0_i32, %c0_i32_0 : i32, i32
  }
  func.func @transform_3(%arg0: i32) -> (i32, i32) {
    %c0_i32 = arith.constant 0 : i32
    %c0_i32_0 = arith.constant 0 : i32
    return %c0_i32, %arg0 : i32, i32
  }
}

module attributes {stable_mosaic.version = 11 : i64} {
  func.func @_convt4_phase_kernel(%arg0: i32, %arg1: memref<4x8x64xf32, #tpu.memory_space<vmem>>, %arg2: memref<4x64x128xbf16, #tpu.memory_space<vmem>>, %arg3: memref<8x1xf32, #tpu.memory_space<vmem>>, %arg4: memref<4x8x128xbf16, #tpu.memory_space<vmem>>, %arg5: memref<1x8x2xf32, #tpu.memory_space<vmem>>) attributes {dimension_semantics = [#tpu.dimension_semantics<parallel>], iteration_bounds = array<i64: 1>, scalar_prefetch = 0 : i64, scratch_operands = 0 : i64, tpu.core_type = #tpu.core_type<tc>, window_params = [{pipeline_mode = #tpu.pipeline_mode<synchronous>, transform_indices = @transform_0, window_bounds = array<i64: 4, 8, 64>}, {transform_indices = @transform_1, window_bounds = array<i64: 4, 64, 128>}, {pipeline_mode = #tpu.pipeline_mode<synchronous>, transform_indices = @transform_2, window_bounds = array<i64: 8, 1>}, {transform_indices = @transform_3, window_bounds = array<i64: 4, 8, 128>}, {transform_indices = @transform_4, window_bounds = array<i64: 1, 8, 2>}]} {
    %c128_i32 = arith.constant 128 : i32
    %0 = arith.muli %arg0, %c128_i32 : i32
    %1 = tpu.iota {dimensions = array<i32: 1>} : vector<1x128xi32>
    %2 = vector.broadcast %0 : i32 to vector<1x128xi32>
    %3 = arith.addi %2, %1 : vector<1x128xi32>
    %c8_i32 = arith.constant 8 : i32
    %4 = vector.broadcast %c8_i32 : i32 to vector<1x128xi32>
    %5 = arith.cmpi slt, %3, %4 : vector<1x128xi32>
    %c0 = arith.constant 0 : index
    %c0_0 = arith.constant 0 : index
    %6 = vector.load %arg3[%c0, %c0_0] : memref<8x1xf32, #tpu.memory_space<vmem>>, vector<8x1xf32>
    %cst = arith.constant 0.000000e+00 : f32
    %7 = vector.broadcast %cst : f32 to vector<8x1xf32>
    %cst_1 = arith.constant 0.000000e+00 : f32
    %8 = vector.broadcast %cst_1 : f32 to vector<8x1xf32>
    %c0_2 = arith.constant 0 : index
    %c0_3 = arith.constant 0 : index
    %c0_4 = arith.constant 0 : index
    %9 = vector.load %arg1[%c0_2, %c0_3, %c0_4] : memref<4x8x64xf32, #tpu.memory_space<vmem>>, vector<1x8x64xf32>
    %10 = vector.shape_cast %9 : vector<1x8x64xf32> to vector<8x64xf32>
    %c0_5 = arith.constant 0 : index
    %c0_6 = arith.constant 0 : index
    %c0_7 = arith.constant 0 : index
    %11 = vector.load %arg2[%c0_5, %c0_6, %c0_7] : memref<4x64x128xbf16, #tpu.memory_space<vmem>>, vector<1x64x128xbf16>
    %12 = vector.shape_cast %11 : vector<1x64x128xbf16> to vector<64x128xbf16>
    %13 = arith.extf %12 : vector<64x128xbf16> to vector<64x128xf32>
    %cst_8 = arith.constant dense<0.000000e+00> : vector<8x128xf32>
    %14 = tpu.matmul %10, %13, %cst_8 {dimension_numbers = #tpu.dot_dimension_numbers<[1], [0], [0], [1], [0, 0, 1, 1], [], []>} : vector<8x64xf32>, vector<64x128xf32>, vector<8x128xf32> -> vector<8x128xf32>
    %15 = vector.broadcast %6 : vector<8x1xf32> to vector<8x128xf32>
    %16 = arith.addf %14, %15 : vector<8x128xf32>
    %cst_9 = arith.constant 0.000000e+00 : f32
    %17 = vector.broadcast %cst_9 : f32 to vector<8x128xf32>
    %18 = arith.maximumf %16, %17 : vector<8x128xf32>
    %19 = arith.truncf %18 : vector<8x128xf32> to vector<8x128xbf16>
    %c0_10 = arith.constant 0 : index
    %c0_11 = arith.constant 0 : index
    %c0_12 = arith.constant 0 : index
    %20 = vector.load %arg4[%c0_10, %c0_11, %c0_12] : memref<4x8x128xbf16, #tpu.memory_space<vmem>>, vector<1x8x128xbf16>
    %21 = vector.shape_cast %20 : vector<1x8x128xbf16> to vector<8x128xbf16>
    %22 = vector.shape_cast %19 : vector<8x128xbf16> to vector<1x8x128xbf16>
    tpu.vector_store %arg4[%c0_10, %c0_11, %c0_12], %22 {strides = array<i32>} : memref<4x8x128xbf16, #tpu.memory_space<vmem>>, vector<1x8x128xbf16>,
    %cst_13 = arith.constant 0.000000e+00 : f32
    %23 = vector.shape_cast %5 : vector<1x128xi1> to vector<1x128xi1>
    %24 = vector.broadcast %23 : vector<1x128xi1> to vector<8x128xi1>
    %25 = vector.broadcast %cst_13 : f32 to vector<8x128xf32>
    %26 = arith.select %24, %18, %25 : vector<8x128xi1>, vector<8x128xf32>
    %cst_14 = arith.constant dense<0.000000e+00> : vector<8xf32>
    %27 = vector.multi_reduction <add>, %26, %cst_14 [1] : vector<8x128xf32> to vector<8xf32>
    %28 = vector.shape_cast %27 : vector<8xf32> to vector<8x1xf32>
    %29 = arith.addf %7, %28 : vector<8x1xf32>
    %30 = arith.mulf %26, %26 : vector<8x128xf32>
    %cst_15 = arith.constant dense<0.000000e+00> : vector<8xf32>
    %31 = vector.multi_reduction <add>, %30, %cst_15 [1] : vector<8x128xf32> to vector<8xf32>
    %32 = vector.shape_cast %31 : vector<8xf32> to vector<8x1xf32>
    %33 = arith.addf %8, %32 : vector<8x1xf32>
    %c1 = arith.constant 1 : index
    %c0_16 = arith.constant 0 : index
    %c0_17 = arith.constant 0 : index
    %34 = vector.load %arg1[%c1, %c0_16, %c0_17] : memref<4x8x64xf32, #tpu.memory_space<vmem>>, vector<1x8x64xf32>
    %35 = vector.shape_cast %34 : vector<1x8x64xf32> to vector<8x64xf32>
    %c1_18 = arith.constant 1 : index
    %c0_19 = arith.constant 0 : index
    %c0_20 = arith.constant 0 : index
    %36 = vector.load %arg2[%c1_18, %c0_19, %c0_20] : memref<4x64x128xbf16, #tpu.memory_space<vmem>>, vector<1x64x128xbf16>
    %37 = vector.shape_cast %36 : vector<1x64x128xbf16> to vector<64x128xbf16>
    %38 = arith.extf %37 : vector<64x128xbf16> to vector<64x128xf32>
    %cst_21 = arith.constant dense<0.000000e+00> : vector<8x128xf32>
    %39 = tpu.matmul %35, %38, %cst_21 {dimension_numbers = #tpu.dot_dimension_numbers<[1], [0], [0], [1], [0, 0, 1, 1], [], []>} : vector<8x64xf32>, vector<64x128xf32>, vector<8x128xf32> -> vector<8x128xf32>
    %40 = vector.broadcast %6 : vector<8x1xf32> to vector<8x128xf32>
    %41 = arith.addf %39, %40 : vector<8x128xf32>
    %cst_22 = arith.constant 0.000000e+00 : f32
    %42 = vector.broadcast %cst_22 : f32 to vector<8x128xf32>
    %43 = arith.maximumf %41, %42 : vector<8x128xf32>
    %44 = arith.truncf %43 : vector<8x128xf32> to vector<8x128xbf16>
    %c1_23 = arith.constant 1 : index
    %c0_24 = arith.constant 0 : index
    %c0_25 = arith.constant 0 : index
    %45 = vector.load %arg4[%c1_23, %c0_24, %c0_25] : memref<4x8x128xbf16, #tpu.memory_space<vmem>>, vector<1x8x128xbf16>
    %46 = vector.shape_cast %45 : vector<1x8x128xbf16> to vector<8x128xbf16>
    %47 = vector.shape_cast %44 : vector<8x128xbf16> to vector<1x8x128xbf16>
    tpu.vector_store %arg4[%c1_23, %c0_24, %c0_25], %47 {strides = array<i32>} : memref<4x8x128xbf16, #tpu.memory_space<vmem>>, vector<1x8x128xbf16>,
    %cst_26 = arith.constant 0.000000e+00 : f32
    %48 = vector.shape_cast %5 : vector<1x128xi1> to vector<1x128xi1>
    %49 = vector.broadcast %48 : vector<1x128xi1> to vector<8x128xi1>
    %50 = vector.broadcast %cst_26 : f32 to vector<8x128xf32>
    %51 = arith.select %49, %43, %50 : vector<8x128xi1>, vector<8x128xf32>
    %cst_27 = arith.constant dense<0.000000e+00> : vector<8xf32>
    %52 = vector.multi_reduction <add>, %51, %cst_27 [1] : vector<8x128xf32> to vector<8xf32>
    %53 = vector.shape_cast %52 : vector<8xf32> to vector<8x1xf32>
    %54 = arith.addf %29, %53 : vector<8x1xf32>
    %55 = arith.mulf %51, %51 : vector<8x128xf32>
    %cst_28 = arith.constant dense<0.000000e+00> : vector<8xf32>
    %56 = vector.multi_reduction <add>, %55, %cst_28 [1] : vector<8x128xf32> to vector<8xf32>
    %57 = vector.shape_cast %56 : vector<8xf32> to vector<8x1xf32>
    %58 = arith.addf %33, %57 : vector<8x1xf32>
    %c2 = arith.constant 2 : index
    %c0_29 = arith.constant 0 : index
    %c0_30 = arith.constant 0 : index
    %59 = vector.load %arg1[%c2, %c0_29, %c0_30] : memref<4x8x64xf32, #tpu.memory_space<vmem>>, vector<1x8x64xf32>
    %60 = vector.shape_cast %59 : vector<1x8x64xf32> to vector<8x64xf32>
    %c2_31 = arith.constant 2 : index
    %c0_32 = arith.constant 0 : index
    %c0_33 = arith.constant 0 : index
    %61 = vector.load %arg2[%c2_31, %c0_32, %c0_33] : memref<4x64x128xbf16, #tpu.memory_space<vmem>>, vector<1x64x128xbf16>
    %62 = vector.shape_cast %61 : vector<1x64x128xbf16> to vector<64x128xbf16>
    %63 = arith.extf %62 : vector<64x128xbf16> to vector<64x128xf32>
    %cst_34 = arith.constant dense<0.000000e+00> : vector<8x128xf32>
    %64 = tpu.matmul %60, %63, %cst_34 {dimension_numbers = #tpu.dot_dimension_numbers<[1], [0], [0], [1], [0, 0, 1, 1], [], []>} : vector<8x64xf32>, vector<64x128xf32>, vector<8x128xf32> -> vector<8x128xf32>
    %65 = vector.broadcast %6 : vector<8x1xf32> to vector<8x128xf32>
    %66 = arith.addf %64, %65 : vector<8x128xf32>
    %cst_35 = arith.constant 0.000000e+00 : f32
    %67 = vector.broadcast %cst_35 : f32 to vector<8x128xf32>
    %68 = arith.maximumf %66, %67 : vector<8x128xf32>
    %69 = arith.truncf %68 : vector<8x128xf32> to vector<8x128xbf16>
    %c2_36 = arith.constant 2 : index
    %c0_37 = arith.constant 0 : index
    %c0_38 = arith.constant 0 : index
    %70 = vector.load %arg4[%c2_36, %c0_37, %c0_38] : memref<4x8x128xbf16, #tpu.memory_space<vmem>>, vector<1x8x128xbf16>
    %71 = vector.shape_cast %70 : vector<1x8x128xbf16> to vector<8x128xbf16>
    %72 = vector.shape_cast %69 : vector<8x128xbf16> to vector<1x8x128xbf16>
    tpu.vector_store %arg4[%c2_36, %c0_37, %c0_38], %72 {strides = array<i32>} : memref<4x8x128xbf16, #tpu.memory_space<vmem>>, vector<1x8x128xbf16>,
    %cst_39 = arith.constant 0.000000e+00 : f32
    %73 = vector.shape_cast %5 : vector<1x128xi1> to vector<1x128xi1>
    %74 = vector.broadcast %73 : vector<1x128xi1> to vector<8x128xi1>
    %75 = vector.broadcast %cst_39 : f32 to vector<8x128xf32>
    %76 = arith.select %74, %68, %75 : vector<8x128xi1>, vector<8x128xf32>
    %cst_40 = arith.constant dense<0.000000e+00> : vector<8xf32>
    %77 = vector.multi_reduction <add>, %76, %cst_40 [1] : vector<8x128xf32> to vector<8xf32>
    %78 = vector.shape_cast %77 : vector<8xf32> to vector<8x1xf32>
    %79 = arith.addf %54, %78 : vector<8x1xf32>
    %80 = arith.mulf %76, %76 : vector<8x128xf32>
    %cst_41 = arith.constant dense<0.000000e+00> : vector<8xf32>
    %81 = vector.multi_reduction <add>, %80, %cst_41 [1] : vector<8x128xf32> to vector<8xf32>
    %82 = vector.shape_cast %81 : vector<8xf32> to vector<8x1xf32>
    %83 = arith.addf %58, %82 : vector<8x1xf32>
    %c3 = arith.constant 3 : index
    %c0_42 = arith.constant 0 : index
    %c0_43 = arith.constant 0 : index
    %84 = vector.load %arg1[%c3, %c0_42, %c0_43] : memref<4x8x64xf32, #tpu.memory_space<vmem>>, vector<1x8x64xf32>
    %85 = vector.shape_cast %84 : vector<1x8x64xf32> to vector<8x64xf32>
    %c3_44 = arith.constant 3 : index
    %c0_45 = arith.constant 0 : index
    %c0_46 = arith.constant 0 : index
    %86 = vector.load %arg2[%c3_44, %c0_45, %c0_46] : memref<4x64x128xbf16, #tpu.memory_space<vmem>>, vector<1x64x128xbf16>
    %87 = vector.shape_cast %86 : vector<1x64x128xbf16> to vector<64x128xbf16>
    %88 = arith.extf %87 : vector<64x128xbf16> to vector<64x128xf32>
    %cst_47 = arith.constant dense<0.000000e+00> : vector<8x128xf32>
    %89 = tpu.matmul %85, %88, %cst_47 {dimension_numbers = #tpu.dot_dimension_numbers<[1], [0], [0], [1], [0, 0, 1, 1], [], []>} : vector<8x64xf32>, vector<64x128xf32>, vector<8x128xf32> -> vector<8x128xf32>
    %90 = vector.broadcast %6 : vector<8x1xf32> to vector<8x128xf32>
    %91 = arith.addf %89, %90 : vector<8x128xf32>
    %cst_48 = arith.constant 0.000000e+00 : f32
    %92 = vector.broadcast %cst_48 : f32 to vector<8x128xf32>
    %93 = arith.maximumf %91, %92 : vector<8x128xf32>
    %94 = arith.truncf %93 : vector<8x128xf32> to vector<8x128xbf16>
    %c3_49 = arith.constant 3 : index
    %c0_50 = arith.constant 0 : index
    %c0_51 = arith.constant 0 : index
    %95 = vector.load %arg4[%c3_49, %c0_50, %c0_51] : memref<4x8x128xbf16, #tpu.memory_space<vmem>>, vector<1x8x128xbf16>
    %96 = vector.shape_cast %95 : vector<1x8x128xbf16> to vector<8x128xbf16>
    %97 = vector.shape_cast %94 : vector<8x128xbf16> to vector<1x8x128xbf16>
    tpu.vector_store %arg4[%c3_49, %c0_50, %c0_51], %97 {strides = array<i32>} : memref<4x8x128xbf16, #tpu.memory_space<vmem>>, vector<1x8x128xbf16>,
    %cst_52 = arith.constant 0.000000e+00 : f32
    %98 = vector.shape_cast %5 : vector<1x128xi1> to vector<1x128xi1>
    %99 = vector.broadcast %98 : vector<1x128xi1> to vector<8x128xi1>
    %100 = vector.broadcast %cst_52 : f32 to vector<8x128xf32>
    %101 = arith.select %99, %93, %100 : vector<8x128xi1>, vector<8x128xf32>
    %cst_53 = arith.constant dense<0.000000e+00> : vector<8xf32>
    %102 = vector.multi_reduction <add>, %101, %cst_53 [1] : vector<8x128xf32> to vector<8xf32>
    %103 = vector.shape_cast %102 : vector<8xf32> to vector<8x1xf32>
    %104 = arith.addf %79, %103 : vector<8x1xf32>
    %105 = arith.mulf %101, %101 : vector<8x128xf32>
    %cst_54 = arith.constant dense<0.000000e+00> : vector<8xf32>
    %106 = vector.multi_reduction <add>, %105, %cst_54 [1] : vector<8x128xf32> to vector<8xf32>
    %107 = vector.shape_cast %106 : vector<8xf32> to vector<8x1xf32>
    %108 = arith.addf %83, %107 : vector<8x1xf32>
    %109 = tpu.concatenate %104, %108 in 1 : vector<8x1xf32>, vector<8x1xf32> -> vector<8x2xf32>
    %110 = vector.shape_cast %109 : vector<8x2xf32> to vector<1x8x2xf32>
    %c0_55 = arith.constant 0 : index
    %c0_56 = arith.constant 0 : index
    %c0_57 = arith.constant 0 : index
    %111 = vector.load %arg5[%c0_55, %c0_56, %c0_57] : memref<1x8x2xf32, #tpu.memory_space<vmem>>, vector<1x8x2xf32>
    tpu.vector_store %arg5[%c0_55, %c0_56, %c0_57], %110 {strides = array<i32>} : memref<1x8x2xf32, #tpu.memory_space<vmem>>, vector<1x8x2xf32>,
    return
  }
  func.func @transform_0(%arg0: i32) -> (i32, i32, i32) {
    %c0_i32 = arith.constant 0 : i32
    %c0_i32_0 = arith.constant 0 : i32
    %c0_i32_1 = arith.constant 0 : i32
    %c0_i32_2 = arith.constant 0 : i32
    return %c0_i32, %c0_i32_0, %c0_i32_1 : i32, i32, i32
  }
  func.func @transform_1(%arg0: i32) -> (i32, i32, i32) {
    %c0_i32 = arith.constant 0 : i32
    %c0_i32_0 = arith.constant 0 : i32
    %c0_i32_1 = arith.constant 0 : i32
    return %c0_i32, %c0_i32_0, %arg0 : i32, i32, i32
  }
  func.func @transform_2(%arg0: i32) -> (i32, i32) {
    %c0_i32 = arith.constant 0 : i32
    %c0_i32_0 = arith.constant 0 : i32
    %c0_i32_1 = arith.constant 0 : i32
    return %c0_i32, %c0_i32_0 : i32, i32
  }
  func.func @transform_3(%arg0: i32) -> (i32, i32, i32) {
    %c0_i32 = arith.constant 0 : i32
    %c0_i32_0 = arith.constant 0 : i32
    %c0_i32_1 = arith.constant 0 : i32
    return %c0_i32, %c0_i32_0, %arg0 : i32, i32, i32
  }
  func.func @transform_4(%arg0: i32) -> (i32, i32, i32) {
    %c0_i32 = arith.constant 0 : i32
    %c0_i32_0 = arith.constant 0 : i32
    %c0_i32_1 = arith.constant 0 : i32
    return %arg0, %c0_i32, %c0_i32_0 : i32, i32, i32
  }
}

module attributes {stable_mosaic.version = 11 : i64} {
  func.func @_convt4_phase_kernel(%arg0: i32, %arg1: memref<4x16x64xf32, #tpu.memory_space<vmem>>, %arg2: memref<4x64x128xbf16, #tpu.memory_space<vmem>>, %arg3: memref<16x1xf32, #tpu.memory_space<vmem>>, %arg4: memref<4x16x128xbf16, #tpu.memory_space<vmem>>, %arg5: memref<1x16x2xf32, #tpu.memory_space<vmem>>) attributes {dimension_semantics = [#tpu.dimension_semantics<parallel>], iteration_bounds = array<i64: 1>, scalar_prefetch = 0 : i64, scratch_operands = 0 : i64, tpu.core_type = #tpu.core_type<tc>, window_params = [{pipeline_mode = #tpu.pipeline_mode<synchronous>, transform_indices = @transform_0, window_bounds = array<i64: 4, 16, 64>}, {transform_indices = @transform_1, window_bounds = array<i64: 4, 64, 128>}, {pipeline_mode = #tpu.pipeline_mode<synchronous>, transform_indices = @transform_2, window_bounds = array<i64: 16, 1>}, {transform_indices = @transform_3, window_bounds = array<i64: 4, 16, 128>}, {transform_indices = @transform_4, window_bounds = array<i64: 1, 16, 2>}]} {
    %c128_i32 = arith.constant 128 : i32
    %0 = arith.muli %arg0, %c128_i32 : i32
    %1 = tpu.iota {dimensions = array<i32: 1>} : vector<1x128xi32>
    %2 = vector.broadcast %0 : i32 to vector<1x128xi32>
    %3 = arith.addi %2, %1 : vector<1x128xi32>
    %c32_i32 = arith.constant 32 : i32
    %4 = vector.broadcast %c32_i32 : i32 to vector<1x128xi32>
    %5 = arith.cmpi slt, %3, %4 : vector<1x128xi32>
    %c0 = arith.constant 0 : index
    %c0_0 = arith.constant 0 : index
    %6 = vector.load %arg3[%c0, %c0_0] : memref<16x1xf32, #tpu.memory_space<vmem>>, vector<16x1xf32>
    %cst = arith.constant 0.000000e+00 : f32
    %7 = vector.broadcast %cst : f32 to vector<16x1xf32>
    %cst_1 = arith.constant 0.000000e+00 : f32
    %8 = vector.broadcast %cst_1 : f32 to vector<16x1xf32>
    %c0_2 = arith.constant 0 : index
    %c0_3 = arith.constant 0 : index
    %c0_4 = arith.constant 0 : index
    %9 = vector.load %arg1[%c0_2, %c0_3, %c0_4] : memref<4x16x64xf32, #tpu.memory_space<vmem>>, vector<1x16x64xf32>
    %10 = vector.shape_cast %9 : vector<1x16x64xf32> to vector<16x64xf32>
    %c0_5 = arith.constant 0 : index
    %c0_6 = arith.constant 0 : index
    %c0_7 = arith.constant 0 : index
    %11 = vector.load %arg2[%c0_5, %c0_6, %c0_7] : memref<4x64x128xbf16, #tpu.memory_space<vmem>>, vector<1x64x128xbf16>
    %12 = vector.shape_cast %11 : vector<1x64x128xbf16> to vector<64x128xbf16>
    %13 = arith.extf %12 : vector<64x128xbf16> to vector<64x128xf32>
    %cst_8 = arith.constant dense<0.000000e+00> : vector<16x128xf32>
    %14 = tpu.matmul %10, %13, %cst_8 {dimension_numbers = #tpu.dot_dimension_numbers<[1], [0], [0], [1], [0, 0, 1, 1], [], []>} : vector<16x64xf32>, vector<64x128xf32>, vector<16x128xf32> -> vector<16x128xf32>
    %15 = vector.broadcast %6 : vector<16x1xf32> to vector<16x128xf32>
    %16 = arith.addf %14, %15 : vector<16x128xf32>
    %cst_9 = arith.constant 0.000000e+00 : f32
    %17 = vector.broadcast %cst_9 : f32 to vector<16x128xf32>
    %18 = arith.maximumf %16, %17 : vector<16x128xf32>
    %19 = arith.truncf %18 : vector<16x128xf32> to vector<16x128xbf16>
    %c0_10 = arith.constant 0 : index
    %c0_11 = arith.constant 0 : index
    %c0_12 = arith.constant 0 : index
    %20 = vector.load %arg4[%c0_10, %c0_11, %c0_12] : memref<4x16x128xbf16, #tpu.memory_space<vmem>>, vector<1x16x128xbf16>
    %21 = vector.shape_cast %20 : vector<1x16x128xbf16> to vector<16x128xbf16>
    %22 = vector.shape_cast %19 : vector<16x128xbf16> to vector<1x16x128xbf16>
    tpu.vector_store %arg4[%c0_10, %c0_11, %c0_12], %22 {strides = array<i32>} : memref<4x16x128xbf16, #tpu.memory_space<vmem>>, vector<1x16x128xbf16>,
    %cst_13 = arith.constant 0.000000e+00 : f32
    %23 = vector.shape_cast %5 : vector<1x128xi1> to vector<1x128xi1>
    %24 = vector.broadcast %23 : vector<1x128xi1> to vector<16x128xi1>
    %25 = vector.broadcast %cst_13 : f32 to vector<16x128xf32>
    %26 = arith.select %24, %18, %25 : vector<16x128xi1>, vector<16x128xf32>
    %cst_14 = arith.constant dense<0.000000e+00> : vector<16xf32>
    %27 = vector.multi_reduction <add>, %26, %cst_14 [1] : vector<16x128xf32> to vector<16xf32>
    %28 = vector.shape_cast %27 : vector<16xf32> to vector<16x1xf32>
    %29 = arith.addf %7, %28 : vector<16x1xf32>
    %30 = arith.mulf %26, %26 : vector<16x128xf32>
    %cst_15 = arith.constant dense<0.000000e+00> : vector<16xf32>
    %31 = vector.multi_reduction <add>, %30, %cst_15 [1] : vector<16x128xf32> to vector<16xf32>
    %32 = vector.shape_cast %31 : vector<16xf32> to vector<16x1xf32>
    %33 = arith.addf %8, %32 : vector<16x1xf32>
    %c1 = arith.constant 1 : index
    %c0_16 = arith.constant 0 : index
    %c0_17 = arith.constant 0 : index
    %34 = vector.load %arg1[%c1, %c0_16, %c0_17] : memref<4x16x64xf32, #tpu.memory_space<vmem>>, vector<1x16x64xf32>
    %35 = vector.shape_cast %34 : vector<1x16x64xf32> to vector<16x64xf32>
    %c1_18 = arith.constant 1 : index
    %c0_19 = arith.constant 0 : index
    %c0_20 = arith.constant 0 : index
    %36 = vector.load %arg2[%c1_18, %c0_19, %c0_20] : memref<4x64x128xbf16, #tpu.memory_space<vmem>>, vector<1x64x128xbf16>
    %37 = vector.shape_cast %36 : vector<1x64x128xbf16> to vector<64x128xbf16>
    %38 = arith.extf %37 : vector<64x128xbf16> to vector<64x128xf32>
    %cst_21 = arith.constant dense<0.000000e+00> : vector<16x128xf32>
    %39 = tpu.matmul %35, %38, %cst_21 {dimension_numbers = #tpu.dot_dimension_numbers<[1], [0], [0], [1], [0, 0, 1, 1], [], []>} : vector<16x64xf32>, vector<64x128xf32>, vector<16x128xf32> -> vector<16x128xf32>
    %40 = vector.broadcast %6 : vector<16x1xf32> to vector<16x128xf32>
    %41 = arith.addf %39, %40 : vector<16x128xf32>
    %cst_22 = arith.constant 0.000000e+00 : f32
    %42 = vector.broadcast %cst_22 : f32 to vector<16x128xf32>
    %43 = arith.maximumf %41, %42 : vector<16x128xf32>
    %44 = arith.truncf %43 : vector<16x128xf32> to vector<16x128xbf16>
    %c1_23 = arith.constant 1 : index
    %c0_24 = arith.constant 0 : index
    %c0_25 = arith.constant 0 : index
    %45 = vector.load %arg4[%c1_23, %c0_24, %c0_25] : memref<4x16x128xbf16, #tpu.memory_space<vmem>>, vector<1x16x128xbf16>
    %46 = vector.shape_cast %45 : vector<1x16x128xbf16> to vector<16x128xbf16>
    %47 = vector.shape_cast %44 : vector<16x128xbf16> to vector<1x16x128xbf16>
    tpu.vector_store %arg4[%c1_23, %c0_24, %c0_25], %47 {strides = array<i32>} : memref<4x16x128xbf16, #tpu.memory_space<vmem>>, vector<1x16x128xbf16>,
    %cst_26 = arith.constant 0.000000e+00 : f32
    %48 = vector.shape_cast %5 : vector<1x128xi1> to vector<1x128xi1>
    %49 = vector.broadcast %48 : vector<1x128xi1> to vector<16x128xi1>
    %50 = vector.broadcast %cst_26 : f32 to vector<16x128xf32>
    %51 = arith.select %49, %43, %50 : vector<16x128xi1>, vector<16x128xf32>
    %cst_27 = arith.constant dense<0.000000e+00> : vector<16xf32>
    %52 = vector.multi_reduction <add>, %51, %cst_27 [1] : vector<16x128xf32> to vector<16xf32>
    %53 = vector.shape_cast %52 : vector<16xf32> to vector<16x1xf32>
    %54 = arith.addf %29, %53 : vector<16x1xf32>
    %55 = arith.mulf %51, %51 : vector<16x128xf32>
    %cst_28 = arith.constant dense<0.000000e+00> : vector<16xf32>
    %56 = vector.multi_reduction <add>, %55, %cst_28 [1] : vector<16x128xf32> to vector<16xf32>
    %57 = vector.shape_cast %56 : vector<16xf32> to vector<16x1xf32>
    %58 = arith.addf %33, %57 : vector<16x1xf32>
    %c2 = arith.constant 2 : index
    %c0_29 = arith.constant 0 : index
    %c0_30 = arith.constant 0 : index
    %59 = vector.load %arg1[%c2, %c0_29, %c0_30] : memref<4x16x64xf32, #tpu.memory_space<vmem>>, vector<1x16x64xf32>
    %60 = vector.shape_cast %59 : vector<1x16x64xf32> to vector<16x64xf32>
    %c2_31 = arith.constant 2 : index
    %c0_32 = arith.constant 0 : index
    %c0_33 = arith.constant 0 : index
    %61 = vector.load %arg2[%c2_31, %c0_32, %c0_33] : memref<4x64x128xbf16, #tpu.memory_space<vmem>>, vector<1x64x128xbf16>
    %62 = vector.shape_cast %61 : vector<1x64x128xbf16> to vector<64x128xbf16>
    %63 = arith.extf %62 : vector<64x128xbf16> to vector<64x128xf32>
    %cst_34 = arith.constant dense<0.000000e+00> : vector<16x128xf32>
    %64 = tpu.matmul %60, %63, %cst_34 {dimension_numbers = #tpu.dot_dimension_numbers<[1], [0], [0], [1], [0, 0, 1, 1], [], []>} : vector<16x64xf32>, vector<64x128xf32>, vector<16x128xf32> -> vector<16x128xf32>
    %65 = vector.broadcast %6 : vector<16x1xf32> to vector<16x128xf32>
    %66 = arith.addf %64, %65 : vector<16x128xf32>
    %cst_35 = arith.constant 0.000000e+00 : f32
    %67 = vector.broadcast %cst_35 : f32 to vector<16x128xf32>
    %68 = arith.maximumf %66, %67 : vector<16x128xf32>
    %69 = arith.truncf %68 : vector<16x128xf32> to vector<16x128xbf16>
    %c2_36 = arith.constant 2 : index
    %c0_37 = arith.constant 0 : index
    %c0_38 = arith.constant 0 : index
    %70 = vector.load %arg4[%c2_36, %c0_37, %c0_38] : memref<4x16x128xbf16, #tpu.memory_space<vmem>>, vector<1x16x128xbf16>
    %71 = vector.shape_cast %70 : vector<1x16x128xbf16> to vector<16x128xbf16>
    %72 = vector.shape_cast %69 : vector<16x128xbf16> to vector<1x16x128xbf16>
    tpu.vector_store %arg4[%c2_36, %c0_37, %c0_38], %72 {strides = array<i32>} : memref<4x16x128xbf16, #tpu.memory_space<vmem>>, vector<1x16x128xbf16>,
    %cst_39 = arith.constant 0.000000e+00 : f32
    %73 = vector.shape_cast %5 : vector<1x128xi1> to vector<1x128xi1>
    %74 = vector.broadcast %73 : vector<1x128xi1> to vector<16x128xi1>
    %75 = vector.broadcast %cst_39 : f32 to vector<16x128xf32>
    %76 = arith.select %74, %68, %75 : vector<16x128xi1>, vector<16x128xf32>
    %cst_40 = arith.constant dense<0.000000e+00> : vector<16xf32>
    %77 = vector.multi_reduction <add>, %76, %cst_40 [1] : vector<16x128xf32> to vector<16xf32>
    %78 = vector.shape_cast %77 : vector<16xf32> to vector<16x1xf32>
    %79 = arith.addf %54, %78 : vector<16x1xf32>
    %80 = arith.mulf %76, %76 : vector<16x128xf32>
    %cst_41 = arith.constant dense<0.000000e+00> : vector<16xf32>
    %81 = vector.multi_reduction <add>, %80, %cst_41 [1] : vector<16x128xf32> to vector<16xf32>
    %82 = vector.shape_cast %81 : vector<16xf32> to vector<16x1xf32>
    %83 = arith.addf %58, %82 : vector<16x1xf32>
    %c3 = arith.constant 3 : index
    %c0_42 = arith.constant 0 : index
    %c0_43 = arith.constant 0 : index
    %84 = vector.load %arg1[%c3, %c0_42, %c0_43] : memref<4x16x64xf32, #tpu.memory_space<vmem>>, vector<1x16x64xf32>
    %85 = vector.shape_cast %84 : vector<1x16x64xf32> to vector<16x64xf32>
    %c3_44 = arith.constant 3 : index
    %c0_45 = arith.constant 0 : index
    %c0_46 = arith.constant 0 : index
    %86 = vector.load %arg2[%c3_44, %c0_45, %c0_46] : memref<4x64x128xbf16, #tpu.memory_space<vmem>>, vector<1x64x128xbf16>
    %87 = vector.shape_cast %86 : vector<1x64x128xbf16> to vector<64x128xbf16>
    %88 = arith.extf %87 : vector<64x128xbf16> to vector<64x128xf32>
    %cst_47 = arith.constant dense<0.000000e+00> : vector<16x128xf32>
    %89 = tpu.matmul %85, %88, %cst_47 {dimension_numbers = #tpu.dot_dimension_numbers<[1], [0], [0], [1], [0, 0, 1, 1], [], []>} : vector<16x64xf32>, vector<64x128xf32>, vector<16x128xf32> -> vector<16x128xf32>
    %90 = vector.broadcast %6 : vector<16x1xf32> to vector<16x128xf32>
    %91 = arith.addf %89, %90 : vector<16x128xf32>
    %cst_48 = arith.constant 0.000000e+00 : f32
    %92 = vector.broadcast %cst_48 : f32 to vector<16x128xf32>
    %93 = arith.maximumf %91, %92 : vector<16x128xf32>
    %94 = arith.truncf %93 : vector<16x128xf32> to vector<16x128xbf16>
    %c3_49 = arith.constant 3 : index
    %c0_50 = arith.constant 0 : index
    %c0_51 = arith.constant 0 : index
    %95 = vector.load %arg4[%c3_49, %c0_50, %c0_51] : memref<4x16x128xbf16, #tpu.memory_space<vmem>>, vector<1x16x128xbf16>
    %96 = vector.shape_cast %95 : vector<1x16x128xbf16> to vector<16x128xbf16>
    %97 = vector.shape_cast %94 : vector<16x128xbf16> to vector<1x16x128xbf16>
    tpu.vector_store %arg4[%c3_49, %c0_50, %c0_51], %97 {strides = array<i32>} : memref<4x16x128xbf16, #tpu.memory_space<vmem>>, vector<1x16x128xbf16>,
    %cst_52 = arith.constant 0.000000e+00 : f32
    %98 = vector.shape_cast %5 : vector<1x128xi1> to vector<1x128xi1>
    %99 = vector.broadcast %98 : vector<1x128xi1> to vector<16x128xi1>
    %100 = vector.broadcast %cst_52 : f32 to vector<16x128xf32>
    %101 = arith.select %99, %93, %100 : vector<16x128xi1>, vector<16x128xf32>
    %cst_53 = arith.constant dense<0.000000e+00> : vector<16xf32>
    %102 = vector.multi_reduction <add>, %101, %cst_53 [1] : vector<16x128xf32> to vector<16xf32>
    %103 = vector.shape_cast %102 : vector<16xf32> to vector<16x1xf32>
    %104 = arith.addf %79, %103 : vector<16x1xf32>
    %105 = arith.mulf %101, %101 : vector<16x128xf32>
    %cst_54 = arith.constant dense<0.000000e+00> : vector<16xf32>
    %106 = vector.multi_reduction <add>, %105, %cst_54 [1] : vector<16x128xf32> to vector<16xf32>
    %107 = vector.shape_cast %106 : vector<16xf32> to vector<16x1xf32>
    %108 = arith.addf %83, %107 : vector<16x1xf32>
    %109 = tpu.concatenate %104, %108 in 1 : vector<16x1xf32>, vector<16x1xf32> -> vector<16x2xf32>
    %110 = vector.shape_cast %109 : vector<16x2xf32> to vector<1x16x2xf32>
    %c0_55 = arith.constant 0 : index
    %c0_56 = arith.constant 0 : index
    %c0_57 = arith.constant 0 : index
    %111 = vector.load %arg5[%c0_55, %c0_56, %c0_57] : memref<1x16x2xf32, #tpu.memory_space<vmem>>, vector<1x16x2xf32>
    tpu.vector_store %arg5[%c0_55, %c0_56, %c0_57], %110 {strides = array<i32>} : memref<1x16x2xf32, #tpu.memory_space<vmem>>, vector<1x16x2xf32>,
    return
  }
  func.func @transform_0(%arg0: i32) -> (i32, i32, i32) {
    %c0_i32 = arith.constant 0 : i32
    %c0_i32_0 = arith.constant 0 : i32
    %c0_i32_1 = arith.constant 0 : i32
    %c0_i32_2 = arith.constant 0 : i32
    return %c0_i32, %c0_i32_0, %c0_i32_1 : i32, i32, i32
  }
  func.func @transform_1(%arg0: i32) -> (i32, i32, i32) {
    %c0_i32 = arith.constant 0 : i32
    %c0_i32_0 = arith.constant 0 : i32
    %c0_i32_1 = arith.constant 0 : i32
    return %c0_i32, %c0_i32_0, %arg0 : i32, i32, i32
  }
  func.func @transform_2(%arg0: i32) -> (i32, i32) {
    %c0_i32 = arith.constant 0 : i32
    %c0_i32_0 = arith.constant 0 : i32
    %c0_i32_1 = arith.constant 0 : i32
    return %c0_i32, %c0_i32_0 : i32, i32
  }
  func.func @transform_3(%arg0: i32) -> (i32, i32, i32) {
    %c0_i32 = arith.constant 0 : i32
    %c0_i32_0 = arith.constant 0 : i32
    %c0_i32_1 = arith.constant 0 : i32
    return %c0_i32, %c0_i32_0, %arg0 : i32, i32, i32
  }
  func.func @transform_4(%arg0: i32) -> (i32, i32, i32) {
    %c0_i32 = arith.constant 0 : i32
    %c0_i32_0 = arith.constant 0 : i32
    %c0_i32_1 = arith.constant 0 : i32
    return %arg0, %c0_i32, %c0_i32_0 : i32, i32, i32
  }
}

module attributes {stable_mosaic.version = 11 : i64} {
  func.func @_gemm_t_bias_scale_kernel(%arg0: i32, %arg1: memref<2x162xf32, #tpu.memory_space<vmem>>, %arg2: memref<162x128xbf16, #tpu.memory_space<vmem>>, %arg3: memref<2x1xf32, #tpu.memory_space<vmem>>, %arg4: memref<2x128xf32, #tpu.memory_space<vmem>>) attributes {dimension_semantics = [#tpu.dimension_semantics<parallel>], iteration_bounds = array<i64: 1>, scalar_prefetch = 0 : i64, scratch_operands = 0 : i64, tpu.core_type = #tpu.core_type<tc>, window_params = [{pipeline_mode = #tpu.pipeline_mode<synchronous>, transform_indices = @transform_0, window_bounds = array<i64: 2, 162>}, {transform_indices = @transform_1, window_bounds = array<i64: 162, 128>}, {pipeline_mode = #tpu.pipeline_mode<synchronous>, transform_indices = @transform_2, window_bounds = array<i64: 2, 1>}, {transform_indices = @transform_3, window_bounds = array<i64: 2, 128>}]} {
    %c0 = arith.constant 0 : index
    %c0_0 = arith.constant 0 : index
    %0 = vector.load %arg1[%c0, %c0_0] : memref<2x162xf32, #tpu.memory_space<vmem>>, vector<2x162xf32>
    %c0_1 = arith.constant 0 : index
    %c0_2 = arith.constant 0 : index
    %1 = vector.load %arg2[%c0_1, %c0_2] : memref<162x128xbf16, #tpu.memory_space<vmem>>, vector<162x128xbf16>
    %2 = arith.extf %1 : vector<162x128xbf16> to vector<162x128xf32>
    %cst = arith.constant dense<0.000000e+00> : vector<2x128xf32>
    %3 = tpu.matmul %0, %2, %cst {dimension_numbers = #tpu.dot_dimension_numbers<[1], [0], [0], [1], [0, 0, 1, 1], [], []>} : vector<2x162xf32>, vector<162x128xf32>, vector<2x128xf32> -> vector<2x128xf32>
    %c0_3 = arith.constant 0 : index
    %c0_4 = arith.constant 0 : index
    %4 = vector.load %arg3[%c0_3, %c0_4] : memref<2x1xf32, #tpu.memory_space<vmem>>, vector<2x1xf32>
    %5 = vector.broadcast %4 : vector<2x1xf32> to vector<2x128xf32>
    %6 = arith.addf %3, %5 : vector<2x128xf32>
    %cst_5 = arith.constant 1.000000e-01 : f32
    %7 = vector.broadcast %cst_5 : f32 to vector<2x128xf32>
    %8 = arith.mulf %6, %7 : vector<2x128xf32>
    %c0_6 = arith.constant 0 : index
    %c0_7 = arith.constant 0 : index
    %9 = vector.load %arg4[%c0_6, %c0_7] : memref<2x128xf32, #tpu.memory_space<vmem>>, vector<2x128xf32>
    tpu.vector_store %arg4[%c0_6, %c0_7], %8 {strides = array<i32>} : memref<2x128xf32, #tpu.memory_space<vmem>>, vector<2x128xf32>,
    return
  }
  func.func @transform_0(%arg0: i32) -> (i32, i32) {
    %c0_i32 = arith.constant 0 : i32
    %c0_i32_0 = arith.constant 0 : i32
    %c0_i32_1 = arith.constant 0 : i32
    return %c0_i32, %c0_i32_0 : i32, i32
  }
  func.func @transform_1(%arg0: i32) -> (i32, i32) {
    %c0_i32 = arith.constant 0 : i32
    %c0_i32_0 = arith.constant 0 : i32
    return %c0_i32, %arg0 : i32, i32
  }
  func.func @transform_2(%arg0: i32) -> (i32, i32) {
    %c0_i32 = arith.constant 0 : i32
    %c0_i32_0 = arith.constant 0 : i32
    %c0_i32_1 = arith.constant 0 : i32
    return %c0_i32, %c0_i32_0 : i32, i32
  }
  func.func @transform_3(%arg0: i32) -> (i32, i32) {
    %c0_i32 = arith.constant 0 : i32
    %c0_i32_0 = arith.constant 0 : i32
    return %c0_i32, %arg0 : i32, i32
  }
}

</mosaic_0001>

<bundles_post_ra>
// kernel: downsample_registration_forward.5
= control target key start
LH: loop header
LB: loop body
LE: loop exit
PB: predicated region body
PF: predicated region fallthrough
CT: control target
= control target key end

     0   :  { %v139_v0 = vmov 0.0|0.0   ;;  %vm140_vm0 = vmmov 0   ;;  %v141_v3 = vmov 0.0   ;;  %v142_v5 = vmov 0   ;;  %s178_s1 = inlined_call_operand.vmem [shape: bf16[18,128], index: 1, kind: input, shape index: {}]   ;;  %s179_s2 = inlined_call_operand.vmem [shape: f32[8,1], index: 2, kind: input, shape index: {}]   ;;  %s180_s0 = inlined_call_operand.vmem [shape: f32[8,18], index: 0, kind: input, shape index: {}]   ;;  %s181_s3 = inlined_call_operand.vmem [shape: bf16[8,128], index: 3, kind: output, shape index: {}]  }
   0x1   :  { %131 = vmatprep.subr.bf16.mxu0 %v139_v0  ;;  %v115_v1 = vld [vmem:[%s178_s1] sm:$0xff]   ;;  %v17_v2 = vld [vmem:[%s178_s1 + $0x8] sm:$0x1]  ;;  %128 = vmatprep.mubr.msk.f32.mxu0 %vm140_vm0, %v141_v3  ;;  %vm31_vm1 = vcmask 1041408   ;;  %vm27_vm2 = vcmask 146432  }
   0x2   :  { %v20_v4 = vunpack.c.l.bf16 %v17_v2  ;;  %133 = vmatpush3.bf16.msra.mxu0 %v115_v1  ;;  %138 = vset.pattern.permute.xlu0 %v142_v5  ;;  %v21_v6 = vld [vmem:[%s179_s2] sm:$0xff] }
   0x3   :  { %126 = vmatprep.subr.mxu0 %v141_v3  ;;  %24 = vperm.xlu0 %138, %v21_v6   ;;  %v14_v7 = vld [vmem:[%s180_s0] sm:$0xff] }
   0x6   :  { %127 = vmatpush3.msk.msra.mxu0 %vm31_vm1, %v20_v4 }
   0x7   :  { %129 = vmatmul.mubr.msk.f32.vlgmr.msra.gmra.mrb[0].mxu0 %vm27_vm2, %v14_v7 }
  0x82   :  { %v25_v8 = vpop.permute.xlu0 %24 }
  0xda   :  { %v101_v9 = vpop.f32.mrb[0].mxu0 }
  0xdb   :  { %v102_v10 = vadd.f32 %v101_v9, %v25_v8  ;;  %v130_v11 = vpop.f32.mrb[1].mxu0 }
  0xdd   :  { %v105_v12 = vmax.f32 %v102_v10, 0.0 }
  0xdf   :  { %v106_v13 = vpack.c.bf16 %v105_v12, %v105_v12 }
  0xe1   :  { %107 = vst [vmem:[%s181_s3] sm:$0xf] %v106_v13 }

// kernel: downsample_registration_forward.6
= control target key start
LH: loop header
LB: loop body
LE: loop exit
PB: predicated region body
PF: predicated region fallthrough
CT: control target
= control target key end

     0   :  { %vm46_vm0 = vcmask 588800   ;;  %v224_v2 = vmov 0   ;;  %s277_s1 = inlined_call_operand.vmem [shape: bf16[72,128], index: 1, kind: input, shape index: {}]   ;;  %s278_s0 = inlined_call_operand.vmem [shape: f32[16,72], index: 0, kind: input, shape index: {}]   ;;  %s279_s2 = inlined_call_operand.vmem [shape: f32[16,1], index: 2, kind: input, shape index: {}]   ;;  %s280_s3 = inlined_call_operand.vmem [shape: bf16[16,128], index: 3, kind: output, shape index: {}]  }
   0x1   :  { %v151_v0 = vld [vmem:[%s277_s1] sm:$0xff]   ;;  %v171_v1 = vld [vmem:[%s277_s1 + $0x8] sm:$0xff]   ;;  %223 = vset.pattern.permute.xlu0 %v224_v2  ;;  %v172_v5 = vld [vmem:[%s277_s1 + $0x10] sm:$0xff]  }
   0x2   :  { %207 = vmatprep.subr.bf16.mxu0 %v151_v0  ;;  %v14_v3 = vld [vmem:[%s278_s0] sm:$0xff]  ;;  %v35_v6 = vld [vmem:[%s279_s2 + $0x8] sm:$0xff]  ;;  %v173_v7 = vld [vmem:[%s277_s1 + $0x18] sm:$0xff]  }
   0x3   :  { %209 = vmatpush3.bf16.msra.mxu0 %v151_v0  ;;  %203 = vmatprep.mubr.msk.f32.mxu0 %vm46_vm0, %v14_v3  ;;  %v34_v4 = vld [vmem:[%s279_s2] sm:$0xff]  ;;  %v15_v10 = vld [vmem:[%s278_s0 + $0x8] sm:$0xff] }
   0x4   :  { %211 = vmatprep.subr.bf16.mxu0 %v171_v1  ;;  %38 = vperm.xlu0 %223, %v34_v4   ;;  %v24_v8 = vld [vmem:[%s277_s1 + $0x20] sm:$0xf] }
   0x5   :  { %v33_v9 = vunpack.c.l.bf16 %v24_v8 }
   0x7   :  { %213 = vmatpush3.bf16.msra.mxu0 %v171_v1 }
   0x8   :  { %215 = vmatprep.subr.bf16.mxu0 %v172_v5  ;;  %43 = vperm.xlu0 %223, %v35_v6  }
   0xb   :  { %217 = vmatpush3.bf16.msra.mxu0 %v172_v5 }
   0xc   :  { %219 = vmatprep.subr.bf16.mxu0 %v173_v7 }
   0xf   :  { %221 = vmatpush3.bf16.msra.mxu0 %v173_v7 }
  0x10   :  { %201 = vmatprep.subr.mxu0 %v33_v9 }
  0x13   :  { %202 = vmatpush3.msra.mxu0 %v33_v9 }
  0x14   :  { %204 = vmatmul.mubr.msk.f32.vlgmr.msra.gmra.mrb[0].mxu0 %vm46_vm0, %v15_v10 }
  0x83   :  { %v39_v11 = vpop.permute.xlu0 %38 }
  0x87   :  { %v44_v12 = vpop.permute.xlu0 %43 }
  0xe7   :  { %v205_v13 = vpop.f32.mrb[0].mxu0 }
  0xe8   :  { %v125_v14 = vadd.f32 %v205_v13, %v44_v12  ;;  %v119_v15 = vpop.f32.mrb[1].mxu0 }
  0xe9   :  { %v120_v16 = vadd.f32 %v119_v15, %v39_v11 }
  0xea   :  { %v129_v17 = vmax.f32 %v125_v14, 0.0 }
  0xeb   :  { %v128_v18 = vmax.f32 %v120_v16, 0.0 }
  0xed   :  { %v169_v19 = vpack.c.bf16 %v129_v17, %v128_v18 }
  0xef   :  { %170 = vst [vmem:[%s280_s3] sm:$0xff] %v169_v19  }

// kernel: downsample_registration_forward.7
= control target key start
LH: loop header
LB: loop body
LE: loop exit
PB: predicated region body
PF: predicated region fallthrough
CT: control target
= control target key end

     0   :  { %v734_v0 = vmov 0.0|0.0   ;;  %vm735_vm0 = vmmov 0   ;;  %v736_v5 = vmov 0.0   ;;  %v737_v6 = vmov 0   ;;  %s853_s1 = inlined_call_operand.vmem [shape: bf16[4,64,128], index: 1, kind: input, shape index: {}]   ;;  %s854_s2 = inlined_call_operand.vmem [shape: f32[8,1], index: 2, kind: input, shape index: {}]   ;;  %s855_s0 = inlined_call_operand.vmem [shape: f32[4,8,64], index: 0, kind: input, shape index: {}]   ;;  %s856_s3 = inlined_call_operand.vmem [shape: bf16[4,8,128], index: 3, kind: output, shape index: {0}]   ;;  %s857_s4 = inlined_call_operand.vmem [shape: f32[1,8,2], index: 4, kind: output, shape index: {1}]  }
   0x1   :  { %681 = vmatprep.subr.bf16.mxu0 %v734_v0  ;;  %693 = vmatprep.subr.bf16.mxu1 %v734_v0  ;;  %v491_v1 = vld [vmem:[%s853_s1] sm:$0xff]   ;;  %v554_v3 = vld [vmem:[%s853_s1 + $0x8] sm:$0xff]   ;;  %v555_v7 = vld [vmem:[%s853_s1 + $0x10] sm:$0xff]   ;;  %vm45_vm1 = vcmask 523264   ;;  %v17_v24 = vlaneseq  ;;  %vm444_vm3 = vcmask 7168   ;;  %vm446_vm4 = vcmask 15360  }
   0x2   :  { %v557_v2 = vld [vmem:[%s853_s1 + $0x20] sm:$0xff]   ;;  %683 = vmatpush3.bf16.msra.mxu0 %v491_v1  ;;  %v558_v4 = vld [vmem:[%s853_s1 + $0x28] sm:$0xff]   ;;  %621 = vmatprep.mubr.msk.f32.mxu0 %vm735_vm0, %v736_v5  ;;  %v559_v8 = vld [vmem:[%s853_s1 + $0x30] sm:$0xff]  }
   0x3   :  { %695 = vmatpush3.bf16.msra.mxu1 %v557_v2  ;;  %684 = vmatprep.subr.bf16.mxu0 %v734_v0  ;;  %v22_v9 = vld [vmem:[%s854_s2] sm:$0xff]  ;;  %v556_v10 = vld [vmem:[%s853_s1 + $0x18] sm:$0xff]   ;;  %v457_v13 = vld [vmem:[%s855_s0 + $0x8] sm:$0xff]  ;;  %v18_v26 = vand.u32 127, %v17_v24 }
   0x4   :  { %696 = vmatprep.subr.bf16.mxu1 %v734_v0  ;;  %640 = vmatprep.mubr.msk.f32.mxu1 %vm735_vm0, %v736_v5  ;;  %v560_v11 = vld [vmem:[%s853_s1 + $0x38] sm:$0xff]   ;;  %v23_v12 = vld [vmem:[%s855_s0] sm:$0xff]  ;;  %v562_v16 = vld [vmem:[%s853_s1 + $0x48] sm:$0xff]  }
   0x5   :  { %733 = vset.pattern.permute.xlu0 %v737_v6  ;;  %v561_v14 = vld [vmem:[%s853_s1 + $0x40] sm:$0xff]   ;;  %v566_v17 = vld [vmem:[%s853_s1 + $0x68] sm:$0xff]   ;;  %v563_v18 = vld [vmem:[%s853_s1 + $0x50] sm:$0xff]   ;;  %vm21_vm2 = vcmp.lt.s32.totalorder %v18_v26, 8 }
   0x6   :  { %686 = vmatpush3.bf16.msra.mxu0 %v554_v3  ;;  %42 = vperm.xlu0 %733, %v22_v9   ;;  %v565_v15 = vld [vmem:[%s853_s1 + $0x60] sm:$0xff]   ;;  %v567_v19 = vld [vmem:[%s853_s1 + $0x70] sm:$0xff]   ;;  %v564_v20 = vld [vmem:[%s853_s1 + $0x58] sm:$0xff]  }
   0x7   :  { %698 = vmatpush3.bf16.msra.mxu1 %v558_v4  ;;  %687 = vmatprep.subr.bf16.mxu0 %v734_v0  ;;  %v568_v21 = vld [vmem:[%s853_s1 + $0x78] sm:$0xff]   ;;  %v468_v22 = vld [vmem:[%s855_s0 + $0x10] sm:$0xff] }
   0x8   :  { %699 = vmatprep.subr.bf16.mxu1 %v734_v0  ;;  %v479_v23 = vld [vmem:[%s855_s0 + $0x18] sm:$0xff] }
   0xa   :  { %689 = vmatpush3.bf16.msra.mxu0 %v555_v7 }
   0xb   :  { %701 = vmatpush3.bf16.msra.mxu1 %v559_v8  ;;  %690 = vmatprep.subr.bf16.mxu0 %v734_v0 }
   0xc   :  { %702 = vmatprep.subr.bf16.mxu1 %v734_v0 }
   0xe   :  { %692 = vmatpush3.bf16.msra.mxu0 %v556_v10 }
   0xf   :  { %704 = vmatpush3.bf16.msra.mxu1 %v560_v11  ;;  %705 = vmatprep.subr.bf16.mxu0 %v734_v0 }
  0x10   :  { %717 = vmatprep.subr.bf16.mxu1 %v734_v0 }
  0x11   :  { %622 = vmatmul.mubr.msk.f32.vlgmr.msra.gmra.mrb[0].mxu0 %vm45_vm1, %v23_v12 }
  0x12   :  { %641 = vmatmul.mubr.msk.f32.vlgmr.msra.gmra.mrb[0].mxu1 %vm45_vm1, %v457_v13  ;;  %707 = vmatpush3.bf16.msra.mxu0 %v561_v14 }
  0x13   :  { %719 = vmatpush3.bf16.msra.mxu1 %v565_v15  ;;  %708 = vmatprep.subr.bf16.mxu0 %v734_v0 }
  0x14   :  { %720 = vmatprep.subr.bf16.mxu1 %v734_v0  ;;  %659 = vmatprep.mubr.msk.f32.mxu0 %vm735_vm0, %v736_v5 }
  0x15   :  { %678 = vmatprep.mubr.msk.f32.mxu1 %vm735_vm0, %v736_v5 }
  0x16   :  { %710 = vmatpush3.bf16.msra.mxu0 %v562_v16 }
  0x17   :  { %722 = vmatpush3.bf16.msra.mxu1 %v566_v17  ;;  %711 = vmatprep.subr.bf16.mxu0 %v734_v0 }
  0x18   :  { %723 = vmatprep.subr.bf16.mxu1 %v734_v0 }
  0x1a   :  { %713 = vmatpush3.bf16.msra.mxu0 %v563_v18 }
  0x1b   :  { %725 = vmatpush3.bf16.msra.mxu1 %v567_v19  ;;  %714 = vmatprep.subr.bf16.mxu0 %v734_v0 }
  0x1c   :  { %726 = vmatprep.subr.bf16.mxu1 %v734_v0 }
  0x1e   :  { %716 = vmatpush3.bf16.msra.mxu0 %v564_v20 }
  0x1f   :  { %728 = vmatpush3.bf16.msra.mxu1 %v568_v21 }
  0x21   :  { %660 = vmatmul.mubr.msk.f32.vlgmr.msra.gmra.mrb[2].mxu0 %vm45_vm1, %v468_v22 }
  0x22   :  { %679 = vmatmul.mubr.msk.f32.vlgmr.msra.gmra.mrb[2].mxu1 %vm45_vm1, %v479_v23 }
  0x85   :  { %v43_v25 = vpop.permute.xlu0 %42 }
  0xe4   :  { %v115_v27 = vpop.f32.mrb[0].mxu0 }
  0xe5   :  { %v220_v28 = vpop.f32.mrb[0].mxu1  ;;  %v116_v29 = vadd.f32 %v115_v27, %v43_v25  ;;  %v623_v31 = vpop.f32.mrb[1].mxu0 }
  0xe6   :  { %v221_v30 = vadd.f32 %v220_v28, %v43_v25  ;;  %v642_v32 = vpop.f32.mrb[1].mxu1 }
  0xe7   :  { %v119_v33 = vmax.f32 %v116_v29, 0.0 }
  0xe8   :  { %v224_v34 = vmax.f32 %v221_v30, 0.0 }
  0xe9   :  { %v120_v35 = vpack.c.bf16 %v119_v33, %v119_v33  ;;  %v124_v38 = vsel %vm21_vm2, %v119_v33, 0.0 }
  0xea   :  { %v225_v36 = vpack.c.bf16 %v224_v34, %v224_v34  ;;  %v228_v37 = vsel %vm21_vm2, %v224_v34, 0.0  ;;  %125 = vadd.xlane.f32.xlu0 %v124_v38  ;;  %v128_v39 = vmul.f32 %v124_v38, %v124_v38 }
  0xeb   :  { %229 = vadd.xlane.f32.xlu1 %v228_v37  ;;  %121 = vst [vmem:[%s856_s3] sm:$0xf] %v120_v35  ;;  %v232_v40 = vmul.f32 %v228_v37, %v228_v37 }
  0xec   :  { %467 = vst [vmem:[%s856_s3 + $0x4] sm:$0xf] %v225_v36 }
  0xef   :  { %129 = vadd.xlane.f32.xlu1 %v128_v39 }
  0xf3   :  { %233 = vadd.xlane.f32.xlu1 %v232_v40 }
  0xf4   :  { %v324_v41 = vpop.f32.mrb[2].mxu0 }
  0xf5   :  { %v428_v42 = vpop.f32.mrb[2].mxu1  ;;  %v325_v43 = vadd.f32 %v324_v41, %v43_v25  ;;  %v661_v45 = vpop.f32.mrb[3].mxu0 }
  0xf6   :  { %v429_v44 = vadd.f32 %v428_v42, %v43_v25  ;;  %v680_v46 = vpop.f32.mrb[3].mxu1 }
  0xf7   :  { %v328_v47 = vmax.f32 %v325_v43, 0.0 }
  0xf8   :  { %v432_v48 = vmax.f32 %v429_v44, 0.0 }
  0xf9   :  { %v329_v49 = vpack.c.bf16 %v328_v47, %v328_v47  ;;  %v332_v51 = vsel %vm21_vm2, %v328_v47, 0.0 }
  0xfa   :  { %v433_v50 = vpack.c.bf16 %v432_v48, %v432_v48  ;;  %333 = vadd.xlane.f32.xlu1 %v332_v51  ;;  %v436_v52 = vsel %vm21_vm2, %v432_v48, 0.0  ;;  %v336_v53 = vmul.f32 %v332_v51, %v332_v51 }
  0xfb   :  { %478 = vst [vmem:[%s856_s3 + $0x8] sm:$0xf] %v329_v49  ;;  %v440_v54 = vmul.f32 %v436_v52, %v436_v52 }
  0xfc   :  { %489 = vst [vmem:[%s856_s3 + $0xc] sm:$0xf] %v433_v50 }
  0xfe   :  { %437 = vadd.xlane.f32.xlu1 %v436_v52 }
 0x102   :  { %337 = vadd.xlane.f32.xlu1 %v336_v53 }
 0x106   :  { %441 = vadd.xlane.f32.xlu1 %v440_v54 }
 0x177   :  { %v126_v60 = vpop.xlane.xlu0 %125 }
 0x178   :  { %v230_v55 = vpop.xlane.xlu1 %229 }
 0x179   :  { %v231_v62 = vadd.f32 %v230_v55, %v126_v60 }
 0x17c   :  { %v130_v56 = vpop.xlane.xlu1 %129 }
 0x180   :  { %v234_v57 = vpop.xlane.xlu1 %233 }
 0x181   :  { %v235_v63 = vadd.f32 %v234_v57, %v130_v56 }
 0x187   :  { %v334_v58 = vpop.xlane.xlu1 %333 }
 0x188   :  { %v335_v0 = vadd.f32 %v334_v58, %v231_v62 }
 0x18b   :  { %v438_v59 = vpop.xlane.xlu1 %437 }
 0x18c   :  { %v439_v3 = vadd.f32 %v438_v59, %v335_v0 }
 0x18f   :  { %v338_v61 = vpop.xlane.xlu1 %337 }
 0x190   :  { %v339_v1 = vadd.f32 %v338_v61, %v235_v63 }
 0x193   :  { %v442_v2 = vpop.xlane.xlu1 %441 }
 0x194   :  { %v443_v4 = vadd.f32 %v442_v2, %v339_v1 }
 0x196   :  { %v445_v5 = vsel %vm444_vm3, %v439_v3, %v443_v4 }
 0x197   :  { %447 = vst.msk [vmem:[%s857_s4] sm:$0xff] %vm446_vm4, %v445_v5 }

// kernel: downsample_registration_forward.8
= control target key start
LH: loop header
LB: loop body
LE: loop exit
PB: predicated region body
PF: predicated region fallthrough
CT: control target
= control target key end

     0   :  { %v912_v3 = vmov 0   ;;  %vm52_vm0 = vcmask 523264   ;;  %v17_v28 = vlaneseq  ;;  %vm554_vm2 = vcmask 7168   ;;  %s1063_s1 = inlined_call_operand.vmem [shape: bf16[4,64,128], index: 1, kind: input, shape index: {}]   ;;  %s1064_s0 = inlined_call_operand.vmem [shape: f32[4,16,64], index: 0, kind: input, shape index: {}]   ;;  %s1065_s2 = inlined_call_operand.vmem [shape: f32[16,1], index: 2, kind: input, shape index: {}]   ;;  %s1066_s3 = inlined_call_operand.vmem [shape: bf16[4,16,128], index: 3, kind: output, shape index: {0}]   ;;  %s1067_s4 = inlined_call_operand.vmem [shape: f32[1,16,2], index: 4, kind: output, shape index: {1}]  }
   0x1   :  { %v629_v0 = vld [vmem:[%s1063_s1] sm:$0xff]   ;;  %v712_v2 = vld [vmem:[%s1063_s1 + $0x8] sm:$0xff]   ;;  %911 = vset.pattern.permute.xlu0 %v912_v3  ;;  %v572_v6 = vld [vmem:[%s1064_s0 + $0x10] sm:$0xff]  ;;  %vm557_vm3 = vcmask 15360  }
   0x2   :  { %v715_v1 = vld [vmem:[%s1063_s1 + $0x20] sm:$0xff]   ;;  %847 = vmatprep.subr.bf16.mxu0 %v629_v0  ;;  %v716_v4 = vld [vmem:[%s1063_s1 + $0x28] sm:$0xff]   ;;  %v713_v7 = vld [vmem:[%s1063_s1 + $0x10] sm:$0xff]   ;;  %805 = vmatprep.mubr.msk.f32.mxu1 %vm52_vm0, %v572_v6  ;;  %v1024_v29 = vand.u32 127, %v17_v28 }
   0x3   :  { %863 = vmatprep.subr.bf16.mxu1 %v715_v1  ;;  %849 = vmatpush3.bf16.msra.mxu0 %v629_v0  ;;  %v24_v5 = vld [vmem:[%s1064_s0] sm:$0xff]  ;;  %v717_v8 = vld [vmem:[%s1063_s1 + $0x30] sm:$0xff]   ;;  %v714_v9 = vld [vmem:[%s1063_s1 + $0x18] sm:$0xff]  }
   0x4   :  { %865 = vmatpush3.bf16.msra.mxu1 %v715_v1  ;;  %851 = vmatprep.subr.bf16.mxu0 %v712_v2  ;;  %v718_v10 = vld [vmem:[%s1063_s1 + $0x38] sm:$0xff]   ;;  %v22_v11 = vld [vmem:[%s1065_s2] sm:$0xff]  ;;  %v23_v12 = vld [vmem:[%s1065_s2 + $0x8] sm:$0xff]  ;;  %vm21_vm1 = vcmp.lt.s32.totalorder %v1024_v29, 32 }
   0x5   :  { %867 = vmatprep.subr.bf16.mxu1 %v716_v4  ;;  %786 = vmatprep.mubr.msk.f32.mxu0 %vm52_vm0, %v24_v5  ;;  %v720_v13 = vld [vmem:[%s1063_s1 + $0x40] sm:$0xff]   ;;  %v25_v15 = vld [vmem:[%s1064_s0 + $0x8] sm:$0xff]  ;;  %v573_v16 = vld [vmem:[%s1064_s0 + $0x18] sm:$0xff] }
   0x6   :  { %44 = vperm.xlu0 %911, %v22_v11   ;;  %v725_v14 = vld [vmem:[%s1063_s1 + $0x60] sm:$0xff]   ;;  %v721_v17 = vld [vmem:[%s1063_s1 + $0x48] sm:$0xff]   ;;  %v604_v20 = vld [vmem:[%s1064_s0 + $0x30] sm:$0xff] }
   0x7   :  { %853 = vmatpush3.bf16.msra.mxu0 %v712_v2  ;;  %v726_v18 = vld [vmem:[%s1063_s1 + $0x68] sm:$0xff]   ;;  %v588_v19 = vld [vmem:[%s1064_s0 + $0x20] sm:$0xff]  ;;  %v722_v21 = vld [vmem:[%s1063_s1 + $0x50] sm:$0xff]  }
   0x8   :  { %869 = vmatpush3.bf16.msra.mxu1 %v716_v4  ;;  %855 = vmatprep.subr.bf16.mxu0 %v713_v7  ;;  %v727_v22 = vld [vmem:[%s1063_s1 + $0x70] sm:$0xff]   ;;  %v723_v23 = vld [vmem:[%s1063_s1 + $0x58] sm:$0xff]   ;;  %v589_v25 = vld [vmem:[%s1064_s0 + $0x28] sm:$0xff] }
   0x9   :  { %871 = vmatprep.subr.bf16.mxu1 %v717_v8  ;;  %v728_v24 = vld [vmem:[%s1063_s1 + $0x78] sm:$0xff]  }
   0xa   :  { %49 = vperm.xlu0 %911, %v23_v12   ;;  %v605_v26 = vld [vmem:[%s1064_s0 + $0x38] sm:$0xff] }
   0xb   :  { %857 = vmatpush3.bf16.msra.mxu0 %v713_v7 }
   0xc   :  { %873 = vmatpush3.bf16.msra.mxu1 %v717_v8  ;;  %859 = vmatprep.subr.bf16.mxu0 %v714_v9 }
   0xd   :  { %875 = vmatprep.subr.bf16.mxu1 %v718_v10 }
   0xf   :  { %861 = vmatpush3.bf16.msra.mxu0 %v714_v9 }
  0x10   :  { %877 = vmatpush3.bf16.msra.mxu1 %v718_v10  ;;  %879 = vmatprep.subr.bf16.mxu0 %v720_v13 }
  0x11   :  { %895 = vmatprep.subr.bf16.mxu1 %v725_v14 }
  0x12   :  { %787 = vmatmul.mubr.msk.f32.vlgmr.msra.gmra.mrb[0].mxu0 %vm52_vm0, %v25_v15 }
  0x13   :  { %806 = vmatmul.mubr.msk.f32.vlgmr.msra.gmra.mrb[0].mxu1 %vm52_vm0, %v573_v16  ;;  %881 = vmatpush3.bf16.msra.mxu0 %v720_v13 }
  0x14   :  { %897 = vmatpush3.bf16.msra.mxu1 %v725_v14  ;;  %883 = vmatprep.subr.bf16.mxu0 %v721_v17 }
  0x15   :  { %899 = vmatprep.subr.bf16.mxu1 %v726_v18  ;;  %824 = vmatprep.mubr.msk.f32.mxu0 %vm52_vm0, %v588_v19 }
  0x16   :  { %843 = vmatprep.mubr.msk.f32.mxu1 %vm52_vm0, %v604_v20 }
  0x17   :  { %885 = vmatpush3.bf16.msra.mxu0 %v721_v17 }
  0x18   :  { %901 = vmatpush3.bf16.msra.mxu1 %v726_v18  ;;  %887 = vmatprep.subr.bf16.mxu0 %v722_v21 }
  0x19   :  { %903 = vmatprep.subr.bf16.mxu1 %v727_v22 }
  0x1b   :  { %889 = vmatpush3.bf16.msra.mxu0 %v722_v21 }
  0x1c   :  { %905 = vmatpush3.bf16.msra.mxu1 %v727_v22  ;;  %891 = vmatprep.subr.bf16.mxu0 %v723_v23 }
  0x1d   :  { %907 = vmatprep.subr.bf16.mxu1 %v728_v24 }
  0x1f   :  { %893 = vmatpush3.bf16.msra.mxu0 %v723_v23 }
  0x20   :  { %909 = vmatpush3.bf16.msra.mxu1 %v728_v24 }
  0x22   :  { %825 = vmatmul.mubr.msk.f32.vlgmr.msra.gmra.mrb[2].mxu0 %vm52_vm0, %v589_v25 }
  0x23   :  { %844 = vmatmul.mubr.msk.f32.vlgmr.msra.gmra.mrb[2].mxu1 %vm52_vm0, %v605_v26 }
  0x85   :  { %v45_v27 = vpop.permute.xlu0 %44 }
  0x89   :  { %v50_v30 = vpop.permute.xlu0 %49 }
  0xe5   :  { %v788_v31 = vpop.f32.mrb[0].mxu0 }
  0xe6   :  { %v807_v32 = vpop.f32.mrb[0].mxu1  ;;  %v131_v33 = vadd.f32 %v788_v31, %v50_v30  ;;  %v125_v35 = vpop.f32.mrb[1].mxu0 }
  0xe7   :  { %v262_v34 = vadd.f32 %v807_v32, %v50_v30  ;;  %v256_v36 = vpop.f32.mrb[1].mxu1  ;;  %v126_v37 = vadd.f32 %v125_v35, %v45_v27 }
  0xe8   :  { %v257_v38 = vadd.f32 %v256_v36, %v45_v27  ;;  %v135_v39 = vmax.f32 %v131_v33, 0.0 }
  0xe9   :  { %v266_v40 = vmax.f32 %v262_v34, 0.0  ;;  %v134_v41 = vmax.f32 %v126_v37, 0.0 }
  0xea   :  { %v265_v42 = vmax.f32 %v257_v38, 0.0  ;;  %v149_v43 = vsel %vm21_vm1, %v135_v39, 0.0 }
  0xeb   :  { %v647_v44 = vpack.c.bf16 %v135_v39, %v134_v41  ;;  %152 = vadd.xlane.f32.xlu1 %v149_v43  ;;  %v148_v46 = vsel %vm21_vm1, %v134_v41, 0.0  ;;  %v279_v48 = vsel %vm21_vm1, %v266_v40, 0.0  ;;  %v157_v62 = vmul.f32 %v149_v43, %v149_v43 }
  0xec   :  { %v668_v45 = vpack.c.bf16 %v266_v40, %v265_v42  ;;  %v156_v47 = vmul.f32 %v148_v46, %v148_v46  ;;  %v278_v55 = vsel %vm21_vm1, %v265_v42, 0.0  ;;  %v287_v3 = vmul.f32 %v279_v48, %v279_v48 }
  0xed   :  { %648 = vst [vmem:[%s1066_s3] sm:$0xff] %v647_v44   ;;  %v286_v5 = vmul.f32 %v278_v55, %v278_v55 }
  0xee   :  { %719 = vst [vmem:[%s1066_s3 + $0x8] sm:$0xff] %v668_v45   ;;  %158 = vadd.xlane.f32.xlu0 %v156_v47 }
  0xef   :  { %282 = vadd.xlane.f32.xlu1 %v279_v48 }
  0xf3   :  { %150 = vadd.xlane.f32.xlu1 %v148_v46 }
  0xf5   :  { %v826_v49 = vpop.f32.mrb[2].mxu0 }
  0xf6   :  { %v845_v50 = vpop.f32.mrb[2].mxu1  ;;  %v392_v51 = vadd.f32 %v826_v49, %v50_v30  ;;  %v386_v53 = vpop.f32.mrb[3].mxu0 }
  0xf7   :  { %v522_v52 = vadd.f32 %v845_v50, %v50_v30  ;;  %v516_v54 = vpop.f32.mrb[3].mxu1  ;;  %v387_v56 = vadd.f32 %v386_v53, %v45_v27  ;;  %280 = vadd.xlane.f32.xlu1 %v278_v55 }
  0xf8   :  { %v517_v57 = vadd.f32 %v516_v54, %v45_v27  ;;  %v396_v58 = vmax.f32 %v392_v51, 0.0 }
  0xf9   :  { %v526_v59 = vmax.f32 %v522_v52, 0.0  ;;  %v395_v60 = vmax.f32 %v387_v56, 0.0 }
  0xfa   :  { %v525_v61 = vmax.f32 %v517_v57, 0.0  ;;  %v409_v0 = vsel %vm21_vm1, %v396_v58, 0.0 }
  0xfb   :  { %v539_v63 = vsel %vm21_vm1, %v526_v59, 0.0  ;;  %v689_v1 = vpack.c.bf16 %v396_v58, %v395_v60  ;;  %160 = vadd.xlane.f32.xlu1 %v157_v62  ;;  %v417_v4 = vmul.f32 %v409_v0, %v409_v0  ;;  %v408_v7 = vsel %vm21_vm1, %v395_v60, 0.0 }
  0xfc   :  { %v710_v2 = vpack.c.bf16 %v526_v59, %v525_v61  ;;  %542 = vadd.xlane.f32.xlu0 %v539_v63  ;;  %v547_v6 = vmul.f32 %v539_v63, %v539_v63  ;;  %v538_v8 = vsel %vm21_vm1, %v525_v61, 0.0  ;;  %v416_v9 = vmul.f32 %v408_v7, %v408_v7 }
  0xfd   :  { %724 = vst [vmem:[%s1066_s3 + $0x10] sm:$0xff] %v689_v1   ;;  %v546_v10 = vmul.f32 %v538_v8, %v538_v8 }
  0xfe   :  { %729 = vst [vmem:[%s1066_s3 + $0x18] sm:$0xff] %v710_v2  }
  0xff   :  { %290 = vadd.xlane.f32.xlu1 %v287_v3 }
 0x100   :  { %420 = vadd.xlane.f32.xlu0 %v417_v4 }
 0x103   :  { %288 = vadd.xlane.f32.xlu1 %v286_v5 }
 0x104   :  { %550 = vadd.xlane.f32.xlu0 %v547_v6 }
 0x107   :  { %412 = vadd.xlane.f32.xlu1 %v409_v0 }
 0x10b   :  { %410 = vadd.xlane.f32.xlu1 %v408_v7 }
 0x10f   :  { %540 = vadd.xlane.f32.xlu1 %v538_v8 }
 0x113   :  { %418 = vadd.xlane.f32.xlu1 %v416_v9 }
 0x117   :  { %548 = vadd.xlane.f32.xlu1 %v546_v10 }
 0x178   :  { %v153_v11 = vpop.xlane.xlu1 %152 }
 0x17b   :  { %v159_v14 = vpop.xlane.xlu0 %158 }
 0x17c   :  { %v283_v12 = vpop.xlane.xlu1 %282 }
 0x17d   :  { %v285_v22 = vadd.f32 %v283_v12, %v153_v11 }
 0x180   :  { %v151_v13 = vpop.xlane.xlu1 %150 }
 0x184   :  { %v281_v15 = vpop.xlane.xlu1 %280 }
 0x185   :  { %v284_v33 = vadd.f32 %v281_v15, %v151_v13 }
 0x188   :  { %v161_v16 = vpop.xlane.xlu1 %160 }
 0x189   :  { %v543_v17 = vpop.xlane.xlu0 %542 }
 0x18c   :  { %v291_v18 = vpop.xlane.xlu1 %290 }
 0x18d   :  { %v421_v19 = vpop.xlane.xlu0 %420  ;;  %v293_v20 = vadd.f32 %v291_v18, %v161_v16 }
 0x18f   :  { %v423_v23 = vadd.f32 %v421_v19, %v293_v20 }
 0x190   :  { %v289_v21 = vpop.xlane.xlu1 %288 }
 0x191   :  { %v551_v24 = vpop.xlane.xlu0 %550  ;;  %v292_v34 = vadd.f32 %v289_v21, %v159_v14 }
 0x192   :  { %v553_v27 = vadd.f32 %v551_v24, %v423_v23 }
 0x194   :  { %v413_v25 = vpop.xlane.xlu1 %412 }
 0x195   :  { %v415_v26 = vadd.f32 %v413_v25, %v285_v22 }
 0x197   :  { %v545_v28 = vadd.f32 %v543_v17, %v415_v26 }
 0x198   :  { %v411_v29 = vpop.xlane.xlu1 %410 }
 0x199   :  { %v556_v30 = vsel %vm554_vm2, %v545_v28, %v553_v27  ;;  %v414_v35 = vadd.f32 %v411_v29, %v284_v33 }
 0x19a   :  { %559 = vst.msk [vmem:[%s1067_s4 + $0x8] sm:$0xff] %vm557_vm3, %v556_v30 }
 0x19c   :  { %v541_v31 = vpop.xlane.xlu1 %540 }
 0x19d   :  { %v544_v38 = vadd.f32 %v541_v31, %v414_v35 }
 0x1a0   :  { %v419_v32 = vpop.xlane.xlu1 %418 }
 0x1a1   :  { %v422_v36 = vadd.f32 %v419_v32, %v292_v34 }
 0x1a4   :  { %v549_v37 = vpop.xlane.xlu1 %548 }
 0x1a5   :  { %v552_v39 = vadd.f32 %v549_v37, %v422_v36 }
 0x1a7   :  { %v555_v40 = vsel %vm554_vm2, %v544_v38, %v552_v39 }
 0x1a8   :  { %558 = vst.msk [vmem:[%s1067_s4] sm:$0xff] %vm557_vm3, %v555_v40 }

// kernel: downsample_registration_forward.9
= control target key start
LH: loop header
LB: loop body
LE: loop exit
PB: predicated region body
PF: predicated region fallthrough
CT: control target
= control target key end

     0   :  { %v242_v0 = vmov 0.0|0.0   ;;  %v243_v2 = vmov 0   ;;  %vm73_vm0 = vcmask 277504   ;;  %v244_v17 = vmov 0.0   ;;  %s307_s1 = inlined_call_operand.vmem [shape: bf16[162,128], index: 1, kind: input, shape index: {}]   ;;  %s308_s2 = inlined_call_operand.vmem [shape: f32[2,1], index: 2, kind: input, shape index: {}]   ;;  %s309_s0 = inlined_call_operand.vmem [shape: f32[2,162], index: 0, kind: input, shape index: {}]   ;;  %s310_s3 = inlined_call_operand.vmem [shape: f32[2,128], index: 3, kind: output, shape index: {}]  }
   0x1   :  { %208 = vmatprep.subr.bf16.mxu0 %v242_v0  ;;  %v160_v1 = vld [vmem:[%s307_s1] sm:$0xff]   ;;  %241 = vset.pattern.permute.xlu0 %v243_v2  ;;  %v199_v3 = vld [vmem:[%s307_s1 + $0x8] sm:$0xff]   ;;  %v200_v7 = vld [vmem:[%s307_s1 + $0x10] sm:$0xff]   ;;  %vm76_vm1 = vcmask 1041408  }
   0x2   :  { %210 = vmatpush1.bf16.msra.mxu0 %v160_v1  ;;  %v57_v4 = vld [vmem:[%s308_s2] sm:$0x3]  ;;  %v201_v8 = vld [vmem:[%s307_s1 + $0x18] sm:$0xff]   ;;  %v203_v10 = vld [vmem:[%s307_s1 + $0x28] sm:$0xff]  }
   0x3   :  { %211 = vmatprep.subr.bf16.mxu0 %v242_v0  ;;  %v156_v5 = vld.sshfl [vmem:[%s309_s0] sm:$0x33 pattern:$0x76325410]  ;;  %60 = vperm.xlu0 %241, %v57_v4   ;;  %v204_v11 = vld [vmem:[%s307_s1 + $0x30] sm:$0xff]   ;;  %v205_v12 = vld [vmem:[%s307_s1 + $0x38] sm:$0xff]  }
   0x4   :  { %v71_v6 = vcombine.high %v156_v5, %v156_v5  ;;  %v202_v9 = vld [vmem:[%s307_s1 + $0x20] sm:$0xff]   ;;  %v207_v14 = vld [vmem:[%s307_s1 + $0x48] sm:$0xff]   ;;  %v35_v15 = vld [vmem:[%s307_s1 + $0x50] sm:$0x1] }
   0x5   :  { %v206_v13 = vld [vmem:[%s307_s1 + $0x40] sm:$0xff]   ;;  %v56_v16 = vunpack.c.l.bf16 %v35_v15 }
   0x6   :  { %213 = vmatpush1.bf16.msra.mxu0 %v199_v3  ;;  %158 = vmatprep.mubr.msk.f32.mxu0 %vm73_vm0, %v71_v6 }
   0x7   :  { %214 = vmatprep.subr.bf16.mxu0 %v242_v0 }
   0xa   :  { %216 = vmatpush1.bf16.msra.mxu0 %v200_v7 }
   0xb   :  { %217 = vmatprep.subr.bf16.mxu0 %v242_v0 }
   0xe   :  { %219 = vmatpush1.bf16.msra.mxu0 %v201_v8 }
   0xf   :  { %220 = vmatprep.subr.bf16.mxu0 %v242_v0 }
  0x12   :  { %222 = vmatpush1.bf16.msra.mxu0 %v202_v9 }
  0x13   :  { %223 = vmatprep.subr.bf16.mxu0 %v242_v0 }
  0x16   :  { %225 = vmatpush1.bf16.msra.mxu0 %v203_v10 }
  0x17   :  { %226 = vmatprep.subr.bf16.mxu0 %v242_v0 }
  0x1a   :  { %228 = vmatpush1.bf16.msra.mxu0 %v204_v11 }
  0x1b   :  { %229 = vmatprep.subr.bf16.mxu0 %v242_v0 }
  0x1e   :  { %231 = vmatpush1.bf16.msra.mxu0 %v205_v12 }
  0x1f   :  { %232 = vmatprep.subr.bf16.mxu0 %v242_v0 }
  0x22   :  { %234 = vmatpush1.bf16.msra.mxu0 %v206_v13 }
  0x23   :  { %235 = vmatprep.subr.bf16.mxu0 %v242_v0 }
  0x26   :  { %237 = vmatpush1.bf16.msra.mxu0 %v207_v14 }
  0x27   :  { %120 = vmatprep.subr.mxu0 %v244_v17 }
  0x2a   :  { %157 = vmatpush1.msk.msra.mxu0 %vm76_vm1, %v56_v16 }
  0x2b   :  { %145 = vmatmul.mubr.f32.vlgmr.msra.gmra.mrb[0].mxu0 %v156_v5 }
  0x82   :  { %v61_v18 = vpop.permute.xlu0 %60 }
  0xfe   :  { %v146_v19 = vpop.f32.mrb[0].mxu0 }
  0xff   :  { %v147_v20 = vadd.f32 %v146_v19, %v61_v18  ;;  %v148_v21 = vpop.f32.mrb[1].mxu0 }
 0x101   :  { %v150_v22 = vmul.f32 0.1, %v147_v20 }
 0x103   :  { %151 = vst [vmem:[%s310_s3] sm:$0x3] %v150_v22 }

</bundles_post_ra>
